<compile_context>
chip_gen: v5e
topology: v5e:2x2
jax: 0.10.0
libtpu: 0.0.40
codegen_flags: <defaults>
</compile_context>

<pallas_src>
import math
import numpy as np
import jax
import jax.numpy as jnp
from jax.experimental import pallas as pl
from jax.experimental.pallas import tpu as pltpu


def _cdiv(a, b):
    return -(-a // b)


def _round_up(x, m):
    return _cdiv(x, m) * m


def _pad2(a, rows, cols):
    r, c = a.shape
    if (r, c) == (rows, cols):
        return a
    return jnp.pad(a, ((0, rows - r), (0, cols - c)))


# --------------------------- VMEM / tile sizing ------------------------------

def _vmem_caps():
    """(working-set budget, vmem_limit_bytes) sized per TPU generation."""
    try:
        cap = int(pltpu.get_tpu_info().vmem_capacity_bytes)
    except Exception:
        cap = 64 * 1024 * 1024               # conservative fallback: v7x VMEM
    ws_budget = min(int(cap * 0.55), 72 * 1024 * 1024)
    vmem_limit = min(cap - 8 * 1024 * 1024, ws_budget + 16 * 1024 * 1024)
    return ws_budget, vmem_limit


def _choose_tiles(M, Cp, Fp, n_in, ws_budget):
    """Pick (tm, tc, tf, full_channels) for the split-branch bottleneck."""
    tf = min(512, Fp)

    # M tiling: avoid pathological over-pad, and give the second TensorCore
    # (v7x megacore) a block when both parallel axes would otherwise collapse.
    n_m = _cdiv(M, 512)
    if n_m == 1 and Fp // tf <= 1 and M > 256:
        n_m = 2
    tm = _round_up(_cdiv(M, n_m), 8)

    def ws(tm_, tc_, tf_):
        # double-buffered bf16 X branches + stacked bf16 W slab + f32 out tile
        return 2 * (n_in * tm_ * tc_ * 2 + n_in * tc_ * tf_ * 2 + tm_ * tf_ * 4)

    # Preferred: whole channel axis resident -> no reduction grid axis at all.
    for tm_try in [t for t in (tm, 256, 128) if t <= tm]:
        if ws(tm_try, Cp, tf) <= ws_budget:
            return tm_try, Cp, tf, True

    # Fallback: tile the per-branch channel axis, accumulate into o_ref.
    tm = min(tm, 256)
    tc = Cp
    while tc > 128 and ws(tm, tc, tf) > ws_budget:
        tc = _round_up(tc // 2, 128)
    while tf > 128 and ws(tm, tc, tf) > ws_budget:
        tf = _round_up(tf // 2, 128)
    return tm, tc, tf, False


# ----------------------------- Pallas kernels --------------------------------

def _make_fullc_kernel(n):
    """All channels resident: one fused multi-dot + bias + ReLU per tile."""
    def kernel(*refs):
        x_refs = refs[:n]
        w_ref, b_ref, o_ref = refs[n], refs[n + 1], refs[n + 2]
        acc = jnp.dot(x_refs[0][...], w_ref[0],
                      preferred_element_type=jnp.float32)
        for s in range(1, n):
            acc += jnp.dot(x_refs[s][...], w_ref[s],
                           preferred_element_type=jnp.float32)
        o_ref[...] = jnp.maximum(acc + b_ref[...], 0.0).astype(o_ref.dtype)
    return kernel


def _make_ctiled_kernel(n):
    """Channel-tiled fallback: accumulate directly into the resident o_ref."""
    def kernel(*refs):
        x_refs = refs[:n]
        w_ref, b_ref, o_ref = refs[n], refs[n + 1], refs[n + 2]
        k = pl.program_id(2)

        @pl.when(k == 0)
        def _():
            # Init with the broadcast bias: deletes the epilogue add.
            o_ref[...] = jnp.broadcast_to(b_ref[...], o_ref.shape).astype(
                o_ref.dtype)

        acc = jnp.dot(x_refs[0][...], w_ref[0],
                      preferred_element_type=jnp.float32)
        for s in range(1, n):
            acc += jnp.dot(x_refs[s][...], w_ref[s],
                           preferred_element_type=jnp.float32)
        o_ref[...] += acc

        @pl.when(k == pl.num_programs(2) - 1)
        def _():
            o_ref[...] = jnp.maximum(o_ref[...], 0.0)
    return kernel


# ------------------------------ kernel wrapper --------------------------------

def psp_bottleneck(xs, w, b):
    """relu(concat(xs, axis=-1) @ w + b) without materializing the concat.

    xs : list of n (M, C) arrays (pyramid branches; ideally already bf16).
    w  : (n*C, F) bottleneck weight (transpose of PyTorch (F, n*C, 1, 1)).
    b  : (F,) bias.
    Returns (M, F) float32.
    """
    n = len(xs)
    M, C = xs[0].shape
    K, F = w.shape
    assert K == n * C

    ws_budget, vmem_limit = _vmem_caps()
    Cp = _round_up(C, 128)
    Fp = _round_up(F, 128)
    tm, tc, tf, full_c = _choose_tiles(M, Cp, Fp, n, ws_budget)
    Mp = _round_up(M, tm)
    Cpp = _round_up(Cp, tc)

    # Branch inputs: bf16 for the MXU; pad only if not already tile-aligned
    # (for real PSPNet shapes C and F are 128-multiples, so no pad happens).
    xb = [_pad2(x if x.dtype == jnp.bfloat16 else x.astype(jnp.bfloat16),
                Mp, Cpp) for x in xs]

    # NOTE: weight/bias cast+pad is constant per model — hoist it out of the
    # step function when calling this under jit in a loop.
    wb = w.reshape(n, C, F).astype(jnp.bfloat16)
    if (Cpp, Fp) != (C, F):
        wb = jnp.pad(wb, ((0, 0), (0, Cpp - C), (0, Fp - F)))
    bb = b.astype(jnp.float32).reshape(1, F)
    if Fp != F:
        bb = jnp.pad(bb, ((0, 0), (0, Fp - F)))

    if full_c:
        kernel = _make_fullc_kernel(n)
        grid = (Mp // tm, Fp // tf)
        x_spec = pl.BlockSpec((tm, Cpp), lambda i, j: (i, 0))
        w_spec = pl.BlockSpec((n, Cpp, tf), lambda i, j: (0, 0, j))
        b_spec = pl.BlockSpec((1, tf), lambda i, j: (0, j))
        o_spec = pl.BlockSpec((tm, tf), lambda i, j: (i, j))
        dims = ("parallel", "parallel")
    else:
        kernel = _make_ctiled_kernel(n)
        grid = (Mp // tm, Fp // tf, Cpp // tc)
        x_spec = pl.BlockSpec((tm, tc), lambda i, j, k: (i, k))
        w_spec = pl.BlockSpec((n, tc, tf), lambda i, j, k: (0, k, j))
        b_spec = pl.BlockSpec((1, tf), lambda i, j, k: (0, j))
        o_spec = pl.BlockSpec((tm, tf), lambda i, j, k: (i, j))
        dims = ("parallel", "parallel", "arbitrary")

    out = pl.pallas_call(
        kernel,
        out_shape=jax.ShapeDtypeStruct((Mp, Fp), jnp.float32),
        grid_spec=pltpu.PrefetchScalarGridSpec(
            num_scalar_prefetch=0,
            grid=grid,
            in_specs=[x_spec] * n + [w_spec, b_spec],
            out_specs=o_spec,
        ),
        compiler_params=pltpu.CompilerParams(
            dimension_semantics=dims,
            vmem_limit_bytes=vmem_limit,
        ),
    )(*xb, wb, bb)
    # Padded rows/cols compute relu(0 + b) != 0; this slice removes them.
    return out[:M, :F]


# ------------------------ exact PyTorch glue matrices ------------------------

def _adaptive_pool_matrix(in_size, out_size):
    """Row-stochastic matrix reproducing nn.AdaptiveAvgPool2d bin edges."""
    P = np.zeros((out_size, in_size), dtype=np.float32)
    for i in range(out_size):
        start = (i * in_size) // out_size
        end = -((-(i + 1) * in_size) // out_size)  # ceil((i+1)*in/out)
        P[i, start:end] = 1.0 / (end - start)
    return P


def _bilinear_matrix(in_size, out_size):
    """F.interpolate(mode='bilinear', align_corners=False) 1-D weight matrix."""
    Wm = np.zeros((out_size, in_size), dtype=np.float32)
    if in_size == 1:
        Wm[:, 0] = 1.0
        return Wm
    scale = in_size / out_size
    for o in range(out_size):
        src = scale * (o + 0.5) - 0.5
        src = max(src, 0.0)
        i0 = min(int(math.floor(src)), in_size - 1)
        i1 = min(i0 + 1, in_size - 1)
        lam = src - i0
        Wm[o, i0] += 1.0 - lam
        Wm[o, i1] += lam
    return Wm


def _pyramid_branches_nhwc(feats, params):
    """List of (N,H,W,C) branch tensors: 4 pooled/conv/upsampled priors + x."""
    N, C, H, W = feats.shape
    x_nhwc = jnp.transpose(feats, (0, 2, 3, 1))
    branches = []
    for size, w_stage in zip(params["sizes"], params["stage_weights"]):
        # Fold AdaptiveAvgPool2d + bilinear upsample into one matrix per axis
        # (the 1x1 conv is channel-only, so it commutes with the spatial maps).
        A_h = jnp.asarray(_bilinear_matrix(size, H) @ _adaptive_pool_matrix(H, size))
        A_w = jnp.asarray(_bilinear_matrix(size, W) @ _adaptive_pool_matrix(W, size))
        branches.append(
            jnp.einsum("hy,wx,nyxc,oc->nhwo", A_h, A_w, x_nhwc, w_stage))
    branches.append(x_nhwc)
    return branches


# ------------------------------- forward pass --------------------------------

def psp_forward(feats, params):
    N, C, H, W = feats.shape
    # Branches are cast to bf16 here (no extra pass over a big concat tensor).
    xs = [b.astype(jnp.bfloat16).reshape(-1, C)
          for b in _pyramid_branches_nhwc(feats, params)]
    out = psp_bottleneck(xs, params["bottleneck_w"].T, params["bottleneck_b"])
    F_out = out.shape[-1]
    # TODO(synk): downstream consumers that accept NHWC can skip this transpose
    # (it is a full extra HBM pass over the output handled by XLA).
    return out.reshape(N, H, W, F_out).transpose(0, 3, 1, 2)


def psp_forward_ref(feats, params):
    """Pure-JAX f32 reference of the same forward (correctness check)."""
    N, C, H, W = feats.shape
    branches = _pyramid_branches_nhwc(feats, params)
    cat = jnp.concatenate(branches, axis=-1).reshape(-1, C * len(branches))
    out = jnp.maximum(cat @ params["bottleneck_w"].T + params["bottleneck_b"], 0.0)
    F_out = out.shape[-1]
    return out.reshape(N, H, W, F_out).transpose(0, 3, 1, 2)


# ----------------------------------- main ------------------------------------

if __name__ == "__main__":
    key = jax.random.PRNGKey(0)
    N, C, H, W = 2, 4, 16, 16
    sizes = (1, 2, 3, 6)
    out_features = 32  # small synthetic out_features (module default is 1024)

    k_x, k_s, k_w, k_b = jax.random.split(key, 4)
    feats = jax.random.normal(k_x, (N, C, H, W), jnp.float32)

    stage_keys = jax.random.split(k_s, len(sizes))
    stage_weights = [0.1 * jax.random.normal(sk, (C, C), jnp.float32)
                     for sk in stage_keys]
    bottleneck_w = 0.1 * jax.random.normal(
        k_w, (out_features, C * (len(sizes) + 1)), jnp.float32)
    bottleneck_b = 0.1 * jax.random.normal(k_b, (out_features,), jnp.float32)

    params = dict(sizes=sizes, stage_weights=stage_weights,
                  bottleneck_w=bottleneck_w, bottleneck_b=bottleneck_b)

    out = psp_forward(feats, params)
    jax.block_until_ready(out)

    # Kernel matmul runs in bf16 (f32 accumulation); compare against the pure
    # f32 reference with a correspondingly loosened tolerance.
    ref = psp_forward_ref(feats, params)
    np.testing.assert_allclose(np.asarray(out), np.asarray(ref),
                               rtol=5e-2, atol=5e-2)
    assert out.shape == (N, out_features, H, W)

    print("KERNEL_OK")
</pallas_src>

<mosaic_0001>
module attributes {stable_mosaic.version = 11 : i64} {
  func.func @kernel(%arg0: i32, %arg1: i32, %arg2: memref<256x128xbf16, #tpu.memory_space<vmem>>, %arg3: memref<256x128xbf16, #tpu.memory_space<vmem>>, %arg4: memref<256x128xbf16, #tpu.memory_space<vmem>>, %arg5: memref<256x128xbf16, #tpu.memory_space<vmem>>, %arg6: memref<256x128xbf16, #tpu.memory_space<vmem>>, %arg7: memref<5x128x128xbf16, #tpu.memory_space<vmem>>, %arg8: memref<1x128xf32, #tpu.memory_space<vmem>>, %arg9: memref<256x128xf32, #tpu.memory_space<vmem>>) attributes {dimension_semantics = [#tpu.dimension_semantics<parallel>, #tpu.dimension_semantics<parallel>], iteration_bounds = array<i64: 2, 1>, scalar_prefetch = 0 : i64, scratch_operands = 0 : i64, tpu.core_type = #tpu.core_type<tc>, window_params = [{transform_indices = @transform_0, window_bounds = array<i64: 256, 128>}, {transform_indices = @transform_1, window_bounds = array<i64: 256, 128>}, {transform_indices = @transform_2, window_bounds = array<i64: 256, 128>}, {transform_indices = @transform_3, window_bounds = array<i64: 256, 128>}, {transform_indices = @transform_4, window_bounds = array<i64: 256, 128>}, {transform_indices = @transform_5, window_bounds = array<i64: 5, 128, 128>}, {transform_indices = @transform_6, window_bounds = array<i64: 1, 128>}, {transform_indices = @transform_7, window_bounds = array<i64: 256, 128>}]} {
    %c0 = arith.constant 0 : index
    %c0_0 = arith.constant 0 : index
    %0 = vector.load %arg2[%c0, %c0_0] : memref<256x128xbf16, #tpu.memory_space<vmem>>, vector<256x128xbf16>
    %c0_1 = arith.constant 0 : index
    %c0_2 = arith.constant 0 : index
    %c0_3 = arith.constant 0 : index
    %1 = vector.load %arg7[%c0_1, %c0_2, %c0_3] : memref<5x128x128xbf16, #tpu.memory_space<vmem>>, vector<1x128x128xbf16>
    %2 = vector.shape_cast %1 : vector<1x128x128xbf16> to vector<128x128xbf16>
    %cst = arith.constant dense<0.000000e+00> : vector<256x128xf32>
    %3 = tpu.matmul %0, %2, %cst {dimension_numbers = #tpu.dot_dimension_numbers<[1], [0], [0], [1], [0, 0, 1, 1], [], []>} : vector<256x128xbf16>, vector<128x128xbf16>, vector<256x128xf32> -> vector<256x128xf32>
    %c0_4 = arith.constant 0 : index
    %c0_5 = arith.constant 0 : index
    %4 = vector.load %arg3[%c0_4, %c0_5] : memref<256x128xbf16, #tpu.memory_space<vmem>>, vector<256x128xbf16>
    %c1 = arith.constant 1 : index
    %c0_6 = arith.constant 0 : index
    %c0_7 = arith.constant 0 : index
    %5 = vector.load %arg7[%c1, %c0_6, %c0_7] : memref<5x128x128xbf16, #tpu.memory_space<vmem>>, vector<1x128x128xbf16>
    %6 = vector.shape_cast %5 : vector<1x128x128xbf16> to vector<128x128xbf16>
    %cst_8 = arith.constant dense<0.000000e+00> : vector<256x128xf32>
    %7 = tpu.matmul %4, %6, %cst_8 {dimension_numbers = #tpu.dot_dimension_numbers<[1], [0], [0], [1], [0, 0, 1, 1], [], []>} : vector<256x128xbf16>, vector<128x128xbf16>, vector<256x128xf32> -> vector<256x128xf32>
    %8 = arith.addf %3, %7 : vector<256x128xf32>
    %c0_9 = arith.constant 0 : index
    %c0_10 = arith.constant 0 : index
    %9 = vector.load %arg4[%c0_9, %c0_10] : memref<256x128xbf16, #tpu.memory_space<vmem>>, vector<256x128xbf16>
    %c2 = arith.constant 2 : index
    %c0_11 = arith.constant 0 : index
    %c0_12 = arith.constant 0 : index
    %10 = vector.load %arg7[%c2, %c0_11, %c0_12] : memref<5x128x128xbf16, #tpu.memory_space<vmem>>, vector<1x128x128xbf16>
    %11 = vector.shape_cast %10 : vector<1x128x128xbf16> to vector<128x128xbf16>
    %cst_13 = arith.constant dense<0.000000e+00> : vector<256x128xf32>
    %12 = tpu.matmul %9, %11, %cst_13 {dimension_numbers = #tpu.dot_dimension_numbers<[1], [0], [0], [1], [0, 0, 1, 1], [], []>} : vector<256x128xbf16>, vector<128x128xbf16>, vector<256x128xf32> -> vector<256x128xf32>
    %13 = arith.addf %8, %12 : vector<256x128xf32>
    %c0_14 = arith.constant 0 : index
    %c0_15 = arith.constant 0 : index
    %14 = vector.load %arg5[%c0_14, %c0_15] : memref<256x128xbf16, #tpu.memory_space<vmem>>, vector<256x128xbf16>
    %c3 = arith.constant 3 : index
    %c0_16 = arith.constant 0 : index
    %c0_17 = arith.constant 0 : index
    %15 = vector.load %arg7[%c3, %c0_16, %c0_17] : memref<5x128x128xbf16, #tpu.memory_space<vmem>>, vector<1x128x128xbf16>
    %16 = vector.shape_cast %15 : vector<1x128x128xbf16> to vector<128x128xbf16>
    %cst_18 = arith.constant dense<0.000000e+00> : vector<256x128xf32>
    %17 = tpu.matmul %14, %16, %cst_18 {dimension_numbers = #tpu.dot_dimension_numbers<[1], [0], [0], [1], [0, 0, 1, 1], [], []>} : vector<256x128xbf16>, vector<128x128xbf16>, vector<256x128xf32> -> vector<256x128xf32>
    %18 = arith.addf %13, %17 : vector<256x128xf32>
    %c0_19 = arith.constant 0 : index
    %c0_20 = arith.constant 0 : index
    %19 = vector.load %arg6[%c0_19, %c0_20] : memref<256x128xbf16, #tpu.memory_space<vmem>>, vector<256x128xbf16>
    %c4 = arith.constant 4 : index
    %c0_21 = arith.constant 0 : index
    %c0_22 = arith.constant 0 : index
    %20 = vector.load %arg7[%c4, %c0_21, %c0_22] : memref<5x128x128xbf16, #tpu.memory_space<vmem>>, vector<1x128x128xbf16>
    %21 = vector.shape_cast %20 : vector<1x128x128xbf16> to vector<128x128xbf16>
    %cst_23 = arith.constant dense<0.000000e+00> : vector<256x128xf32>
    %22 = tpu.matmul %19, %21, %cst_23 {dimension_numbers = #tpu.dot_dimension_numbers<[1], [0], [0], [1], [0, 0, 1, 1], [], []>} : vector<256x128xbf16>, vector<128x128xbf16>, vector<256x128xf32> -> vector<256x128xf32>
    %23 = arith.addf %18, %22 : vector<256x128xf32>
    %c0_24 = arith.constant 0 : index
    %c0_25 = arith.constant 0 : index
    %24 = vector.load %arg8[%c0_24, %c0_25] : memref<1x128xf32, #tpu.memory_space<vmem>>, vector<1x128xf32>
    %25 = vector.broadcast %24 : vector<1x128xf32> to vector<256x128xf32>
    %26 = arith.addf %23, %25 : vector<256x128xf32>
    %cst_26 = arith.constant 0.000000e+00 : f32
    %27 = vector.broadcast %cst_26 : f32 to vector<256x128xf32>
    %28 = arith.maximumf %26, %27 : vector<256x128xf32>
    %c0_27 = arith.constant 0 : index
    %c0_28 = arith.constant 0 : index
    %29 = vector.load %arg9[%c0_27, %c0_28] : memref<256x128xf32, #tpu.memory_space<vmem>>, vector<256x128xf32>
    tpu.vector_store %arg9[%c0_27, %c0_28], %28 {strides = array<i32>} : memref<256x128xf32, #tpu.memory_space<vmem>>, vector<256x128xf32>,
    return
  }
  func.func @transform_0(%arg0: i32, %arg1: i32) -> (i32, i32) {
    %c0_i32 = arith.constant 0 : i32
    %c0_i32_0 = arith.constant 0 : i32
    return %arg0, %c0_i32 : i32, i32
  }
  func.func @transform_1(%arg0: i32, %arg1: i32) -> (i32, i32) {
    %c0_i32 = arith.constant 0 : i32
    %c0_i32_0 = arith.constant 0 : i32
    return %arg0, %c0_i32 : i32, i32
  }
  func.func @transform_2(%arg0: i32, %arg1: i32) -> (i32, i32) {
    %c0_i32 = arith.constant 0 : i32
    %c0_i32_0 = arith.constant 0 : i32
    return %arg0, %c0_i32 : i32, i32
  }
  func.func @transform_3(%arg0: i32, %arg1: i32) -> (i32, i32) {
    %c0_i32 = arith.constant 0 : i32
    %c0_i32_0 = arith.constant 0 : i32
    return %arg0, %c0_i32 : i32, i32
  }
  func.func @transform_4(%arg0: i32, %arg1: i32) -> (i32, i32) {
    %c0_i32 = arith.constant 0 : i32
    %c0_i32_0 = arith.constant 0 : i32
    return %arg0, %c0_i32 : i32, i32
  }
  func.func @transform_5(%arg0: i32, %arg1: i32) -> (i32, i32, i32) {
    %c0_i32 = arith.constant 0 : i32
    %c0_i32_0 = arith.constant 0 : i32
    %c0_i32_1 = arith.constant 0 : i32
    return %c0_i32, %c0_i32_0, %arg1 : i32, i32, i32
  }
  func.func @transform_6(%arg0: i32, %arg1: i32) -> (i32, i32) {
    %c0_i32 = arith.constant 0 : i32
    %c0_i32_0 = arith.constant 0 : i32
    return %c0_i32, %arg1 : i32, i32
  }
  func.func @transform_7(%arg0: i32, %arg1: i32) -> (i32, i32) {
    %c0_i32 = arith.constant 0 : i32
    return %arg0, %arg1 : i32, i32
  }
}

</mosaic_0001>

<bundles_post_ra>
// kernel: tpu_custom_call.1
= control target key start
LH: loop header
LB: loop body
LE: loop exit
PB: predicated region body
PF: predicated region fallthrough
CT: control target
= control target key end

     0   :  { %s3899_s0 = inlined_call_operand.hbm [shape: bf16[512,128], index: 0, kind: input, shape index: {}]   ;;  %s3900_s1 = inlined_call_operand.hbm [shape: bf16[512,128], index: 1, kind: input, shape index: {}]   ;;  %s3901_s2 = inlined_call_operand.hbm [shape: bf16[512,128], index: 2, kind: input, shape index: {}]   ;;  %s3902_s3 = inlined_call_operand.hbm [shape: bf16[512,128], index: 3, kind: input, shape index: {}]   ;;  %s3903_s4 = inlined_call_operand.hbm [shape: bf16[512,128], index: 4, kind: input, shape index: {}]   ;;  %s3904_s5 = inlined_call_operand.hbm [shape: bf16[5,128,128], index: 5, kind: input, shape index: {}]   ;;  %s3905_s6 = inlined_call_operand.vmem [shape: f32[1,128], index: 6, kind: input, shape index: {}]   ;;  %s3906_s7 = inlined_call_operand.hbm [shape: f32[512,128], index: 7, kind: output, shape index: {}]  }
   0x1   :  { %3918 = sst [smem:[#allocation25_spill]] %s3899_s0 }
   0x2   :  { %3919 = sst [smem:[#allocation26_spill]] %s3900_s1 }
   0x3   :  { %3920 = sst [smem:[#allocation27_spill]] %s3902_s3 }
   0x4   :  { %3921 = sst [smem:[#allocation28_spill]] %s3904_s5 }
   0x5   :  { %12 = vsyncpa [#allocation3], 0 }
   0x6   :  { %14 = vsyncpa [#allocation3 + $0x1], 0 }
   0x7   :  { %15 = vsyncpa [#allocation6], 0 }
   0x8   :  { %17 = vsyncpa [#allocation6 + $0x1], 0 }
   0x9   :  { %18 = vsyncpa [#allocation9], 0 }
   0xa   :  { %20 = vsyncpa [#allocation9 + $0x1], 0 }
   0xb   :  { %21 = vsyncpa [#allocation12], 0 }
   0xc   :  { %22 = vsyncpa [#allocation4], 0 }
   0xd   :  { %24 = vsyncpa [#allocation4 + $0x1], 0  ;;  %s3417_s24 = smov 0   ;;  %s3419_s25 = smov 0  }
   0xe   :  { %s3421_s26 = smov 0   ;;  %s3423_s27 = smov 0  }
   0xf   :  { %s3425_s28 = smov 0   ;;  %s3427_s29 = smov 0  }
  0x10 LB: > { %3922 = sst [smem:[#allocation19_spill]] %s3358_s26  ;;  %s42_s30 = sadd.s32 1, %s3366_s28  ;;  %s3370_s29 = sphi %s3427_s29, %s30_s29   ;;  %s3366_s28 = sphi %s3425_s28, %s3945_s28   ;;  %s3362_s27 = sphi %s3423_s27, %s3944_s27   ;;  %s3358_s26 = sphi %s3421_s26, %s3943_s26   ;;  %s3354_s25 = sphi %s3419_s25, %s3947_s25   ;;  %s3350_s24 = sphi %s3417_s24, %s3946_s24  }
  0x11   : > { %3923 = sst [smem:[#allocation20_spill]] %s3366_s28  ;;  %s49_s8 = sadd.s32 1, %s3358_s26 }
  0x12   : > { %3924 = sst [smem:[#allocation21_spill]] %s3370_s29  ;;  %p44_p0 = scmp.ge.s32.totalorder %s42_s30, 2 }
  0x13   : > { %p56_p1 = scmp.ne.s32.totalorder %s3358_s26, %s3354_s25  ;;  %p57_p2 = scmp.eq.s32.totalorder %s3370_s29, 0 }
  0x14   : > { %s3949_s30 = smov (%p44_p0, %s42_s30), 0  ;;  %p2339_p4 = scmp.ge.s32.totalorder %s3370_s29, 2 }
  0x15   : > { %3925 = sst [smem:[#allocation22_spill]] %s3949_s30  ;;  %p58_p3 = por %p57_p2, %p56_p1 }
  0x16   : > { %s46_s9 = ssub.s32 %s3366_s28, %s3949_s30  ;;  %p3039_p6 = scmp.lt.s32.totalorder %s3370_s29, 2 }
  0x17   : > { %p47_p5 = scmp.eq.s32.totalorder %s46_s9, 0  ;;  %s3907_s10 = sand.u32 1, %s3358_s26  }
  0x18   : > { %s3463_s11 = sshll.u32 %s3366_s28, 7  ;;  %s3470_s13 = sshll.u32 %s3907_s10, 7 }
  0x19   : > { %s3466_s12 = scalar_select %p47_p5, %s3358_s26, %s49_s8  }
  0x1a   : > { %p3472_p7 = pnand %p3039_p6, %p58_p3  ;;  %s314_s15 = sand.u32 1, %s3370_s29  }
  0x1b   : > { %3926 = sst [smem:[#allocation23_spill]] %s3466_s12  ;;  %s318_s19 = scalar_lea.vmem [#allocation5], %s3470_s13 }
  0x1c   : > { %s3928_s1 = sld [smem:[#allocation26_spill]]  ;;  %s326_s20 = sshll.u32 %s318_s19, 4  ;;  %s327_s20 = int_to_ptr.vmem [resolvable:$true] %s326_s20 }
  0x1d   : > { %s3482_s22 = scalar_lea.sflag [#allocation6], %s314_s15  ;;  %s3908_s23 = smov 64  }
  0x1e   : > { %s3910_s8 = smov 4   ;;  %s3929_s3 = sld [smem:[#allocation27_spill]] }
  0x1f   : > { %s362_s19 = scalar_lea.vmem [#allocation8], %s3470_s13  ;;  %p62_p8 = scmp.ne.s32.totalorder %s3354_s25, %s3350_s24 }
  0x20   : > { %s370_s10 = sshll.u32 %s362_s19, 4  ;;  %p2336_p13 = scmp.ge.s32.totalorder %s3370_s29, 1  ;;  %s371_s10 = int_to_ptr.vmem [resolvable:$true] %s370_s10 }
  0x21   : > { %p257_p3 = scmp.lt.s32.totalorder %s3370_s29, 3  ;;  %s3934_s5 = sld [smem:[#allocation28_spill]] }
  0x22   : > { %s323_s18 = scalar_lea.hbm %s3928_s1, %s3463_s11  ;;  %s3495_s1 = scalar_lea.sflag [#allocation9], %s314_s15 }
  0x23   : > { %s324_s21 = sshll.u32 %s323_s18, 4  ;;  %p3533_p5 = pnand %p2336_p13, %p257_p3  ;;  %s325_s21 = int_to_ptr.hbm [resolvable:$true] %s324_s21 }
  0x24   : > { %3024 = dma.hbm_to_vmem [thread:$0]  (!%p3472_p7), %s325_s21, 2048, %s327_s20, %s3482_s22, %s3908_s23, %s3908_s23, %s3910_s8  }
  0x25   : > { %s367_s17 = scalar_lea.hbm %s3929_s3, %s3463_s11  ;;  %s3504_s20 = sadd.s32 4294967295, %s3370_s29  }
  0x26   : > { %s368_s18 = sshll.u32 %s367_s17, 4  ;;  %s2335_s21 = sadd.s32 4294967294, %s3370_s29   ;;  %s369_s18 = int_to_ptr.hbm [resolvable:$true] %s368_s18 }
  0x27   : > { %3030 = dma.hbm_to_vmem [thread:$0]  (!%p3472_p7), %s369_s18, 2048, %s371_s10, %s3495_s1, %s3908_s23, %s3908_s23, %s3910_s8  }
  0x28   : > { %p63_p9 = scmp.eq.s32.totalorder %s3504_s20, 0  ;;  %p244_p10 = scmp.eq.s32.totalorder %s3504_s20, 1 }
  0x29   : > { %p250_p11 = scmp.eq.s32.totalorder %s2335_s21, 1  ;;  %s270_s18 = sshll.u32 %s3934_s5, 4  ;;  %s271_s18 = int_to_ptr.hbm [resolvable:$true] %s270_s18 }
  0x2a   : > { %p3513_p12 = por %p63_p9, %p62_p8  ;;  %p3521_p0 = por %p244_p10, %p56_p1 }
  0x2b   : > { %p3525_p2 = por %p250_p11, %p62_p8  ;;  %s3374_s21 = smov [#allocation11]  }
  0x2c   : > { %s272_s23 = sshll.u32 %s3374_s21, 4  ;;  %p3014_p1 = pneg %p3533_p5  ;;  %s273_s23 = int_to_ptr.vmem [resolvable:$true] %s272_s23 }
  0x2d   : > { %s3932_s9 = scalar_select %p3525_p2, 1, 0 }
  0x2e   : > { %s3936_s0 = sld [smem:[#allocation25_spill]]  ;;  %p3015_p6 = pnand %p3014_p1, %p63_p9 }
  0x2f   : > { %3933 = sst [smem:[#allocation24_spill]] %s3932_s9  ;;  %s296_s5 = scalar_lea.vmem [#allocation2], %s3470_s13 }
  0x30   : > { %s304_s30 = sshll.u32 %s296_s5, 4  ;;  %s3937_s28 = smov 4   ;;  %s305_s30 = int_to_ptr.vmem [resolvable:$true] %s304_s30 }
  0x31   : > { %s3938_s21 = smov 64   ;;  %s3939_s12 = sand.u32 1, %s3358_s26  }
  0x32   : > { %3017 = dma.hbm_to_vmem [thread:$0]  (!%p3015_p6), %s271_s18, 5120, %s273_s23, [#allocation12], %s3938_s21, %s3938_s21, %s3937_s28  }
  0x33   : > { %s293_s3 = scalar_lea.sflag [#allocation3], %s3939_s12  ;;  %s340_s5 = scalar_lea.vmem [#allocation7], %s3470_s13 }
  0x34   : > { %s301_s16 = scalar_lea.hbm %s3936_s0, %s3463_s11  ;;  %s345_s0 = scalar_lea.hbm %s3901_s2, %s3463_s11 }
  0x35   : > { %s302_s17 = sshll.u32 %s301_s16, 4  ;;  %s346_s29 = sshll.u32 %s345_s0, 4  ;;  %s303_s17 = int_to_ptr.hbm [resolvable:$true] %s302_s17  ;;  %s347_s29 = int_to_ptr.hbm [resolvable:$true] %s346_s29 }
  0x36   : > { %3021 = dma.hbm_to_vmem [thread:$0]  (!%p3472_p7), %s303_s17, 2048, %s305_s30, %s293_s3, %s3938_s21, %s3938_s21, %s3937_s28  }
  0x37   : > { %s348_s9 = sshll.u32 %s340_s5, 4  ;;  %s389_s18 = scalar_lea.hbm %s3903_s4, %s3463_s11  ;;  %s349_s9 = int_to_ptr.vmem [resolvable:$true] %s348_s9 }
  0x38   : > { %3027 = dma.hbm_to_vmem [thread:$0]  (!%p3472_p7), %s347_s29, 2048, %s349_s9, %s3482_s22, %s3938_s21, %s3938_s21, %s3937_s28  }
  0x39   : > { %s390_s26 = sshll.u32 %s389_s18, 4  ;;  %s384_s30 = scalar_lea.vmem [#allocation10], %s3470_s13  ;;  %s391_s26 = int_to_ptr.hbm [resolvable:$true] %s390_s26 }
  0x3a   : > { %s392_s17 = sshll.u32 %s384_s30, 4  ;;  %404 = sbr.rel (%p3533_p5) target bundleno = 562 (0x232), region = 48  ;;  %s393_s17 = int_to_ptr.vmem [resolvable:$true] %s392_s17 }
  0x3b   : > { %3033 = dma.hbm_to_vmem [thread:$0]  (!%p3472_p7), %s391_s26, 2048, %s393_s17, %s3495_s1, %s3938_s21, %s3938_s21, %s3937_s28  }
  0x3c   : > { %s3581_s0 = sand.u32 (!%p3533_p5), 1, %s3354_s25  }
  0x3d   : > { %s2356_s29 = sshll.u32 (!%p3533_p5), %s3581_s0, 7  ;;  %s407_s11 = scalar_lea.sflag (!%p3533_p5), [#allocation3], %s3581_s0 }
  0x3e   : > { %s3585_s13 = scalar_lea.vmem (!%p3533_p5), [#allocation2], %s2356_s29 }
  0x3f   : > { %3329 = dma.done.wait (%p3513_p12), %s407_s11, 2048  }
  0x40   : > { %3331 = vsyncadd (%p3513_p12), %s407_s11, 4294965248  ;;  %s416_s1 = sand.u32 1, %s3504_s20   ;;  %s3592_s28 = scalar_lea.vmem [#allocation5], %s2356_s29 }
  0x41   : > { %s417_s26 = scalar_lea.sflag [#allocation6], %s416_s1 }
  0x42   : > { %3333 = dma.done.wait (%p3513_p12), %s417_s26, 4096  }
  0x43   : > { %3335 = vsyncadd (%p3513_p12), %s417_s26, 4294963200  ;;  %s3598_s14 = scalar_lea.vmem [#allocation7], %s2356_s29  ;;  %s437_s22 = scalar_lea.sflag [#allocation9], %s416_s1 }
  0x44   : > { %s3600_s9 = scalar_lea.vmem [#allocation8], %s2356_s29 }
  0x45   : > { %3337 = dma.done.wait (%p3513_p12), %s437_s22, 4096  }
  0x46   : > { %3339 = vsyncadd (%p3513_p12), %s437_s22, 4294963200  ;;  %s3606_s19 = scalar_lea.vmem [#allocation10], %s2356_s29 }
  0x47   : > { %3341 = dma.done.wait (%p63_p9), [#allocation12], 5120  }
  0x48   : > { %3343 = vsyncadd (%p63_p9), [#allocation12], 4294962176  ;;  %v2900_v0 = vld [vmem:[#allocation11 + $0x78] sm:$0xff]  ;;  %v2899_v1 = vld [vmem:[#allocation11 + $0x70] sm:$0xff]  ;;  %s2362_s21 = sshll.u32 %s3581_s0, 8  ;;  %s2973_s8 = sshll.u32 %s3362_s27, 8 }
  0x49   : > { %2974 = vmatpush.bf16.msra.mxu1 %v2900_v0  ;;  %2975 = vmatpush.bf16.msra.mxu2 %v2900_v0  ;;  %v2898_v2 = vld [vmem:[#allocation11 + $0x68] sm:$0xff]  ;;  %v2897_v3 = vld [vmem:[#allocation11 + $0x60] sm:$0xff]  ;;  %v2896_v4 = vld [vmem:[#allocation11 + $0x58] sm:$0xff]  ;;  %s3741_s3 = scalar_lea.vmem [#allocation13], %s2362_s21  ;;  %s2137_s12 = scalar_lea.hbm %s3906_s7, %s2973_s8 }
  0x4a   : > { %2976 = vmatpush.bf16.msra.mxu3 %v2900_v0  ;;  %760 = vmatpush.bf16.msra.mxu0 %v2900_v0  ;;  %v2895_v5 = vld [vmem:[#allocation11 + $0x50] sm:$0xff]  ;;  %v2894_v6 = vld [vmem:[#allocation11 + $0x48] sm:$0xff]  ;;  %v2893_v7 = vld [vmem:[#allocation11 + $0x40] sm:$0xff]  ;;  %s2138_s23 = sshll.u32 %s3741_s3, 4  ;;  %s2140_s18 = sshll.u32 %s2137_s12, 4  ;;  %s2139_s23 = int_to_ptr.vmem [resolvable:$true] %s2138_s23  ;;  %s2141_s18 = int_to_ptr.hbm [resolvable:$true] %s2140_s18 }
  0x4b   : > { %v2924_v8 = vld [vmem:[#allocation11 + $0xb8] sm:$0xff]  ;;  %v2881_v10 = vld [vmem:[%s3592_s28 + $0x20] sm:$0xff]  ;;  %v2923_v16 = vld [vmem:[#allocation11 + $0xb0] sm:$0xff]  ;;  %s2125_s27 = scalar_lea.sflag [#allocation4], %s3581_s0  ;;  %s3290_s30 = sshra.s32 %s2141_s18, 4  ;;  %s3291_s30 = int_to_ptr.hbm [resolvable:$true] %s3290_s30 }
  0x4c   : > { %v2948_v9 = vld [vmem:[#allocation11 + $0xf8] sm:$0xff]  ;;  %v2885_v11 = vld [vmem:[%s3592_s28 + $0x40] sm:$0xff]  ;;  %v2947_v17 = vld [vmem:[#allocation11 + $0xf0] sm:$0xff]  ;;  %s3292_s17 = scalar_lea.hbm %s3291_s30, 256  ;;  %p3297_p10 = scmp.lt.s32.totalorder %s3291_s30, %s3906_s7 }
  0x4d   : > { %2977 = vmatpush.bf16.msra.mxu1 %v2899_v1  ;;  %2978 = vmatpush.bf16.msra.mxu2 %v2899_v1  ;;  %v2889_v12 = vld [vmem:[%s3592_s28 + $0x60] sm:$0xff]  ;;  %v2876_v14 = vld [vmem:[#allocation11 + $0x38] sm:$0xff]  ;;  %v2875_v18 = vld [vmem:[#allocation11 + $0x30] sm:$0xff]  ;;  %p3293_p7 = scmp.ne.s32.totalorder %s3291_s30, %s3292_s17 }
  0x4e   : > { %2979 = vmatpush.bf16.msra.mxu3 %v2899_v1  ;;  %761 = vmatpush.bf16.msra.mxu0 %v2899_v1  ;;  %v2877_v13 = vld [vmem:[%s3592_s28] sm:$0xff]  ;;  %v2972_v15 = vld [vmem:[#allocation11 + $0x138] sm:$0xff]  ;;  %v2971_v19 = vld [vmem:[#allocation11 + $0x130] sm:$0xff] }
  0x4f   : > { %v2922_v20 = vld [vmem:[#allocation11 + $0xa8] sm:$0xff]  ;;  %v2921_v24 = vld [vmem:[#allocation11 + $0xa0] sm:$0xff]  ;;  %v2920_v28 = vld [vmem:[#allocation11 + $0x98] sm:$0xff]  ;;  %p3294_p8 = pnand %p3293_p7, %p3521_p0 }
  0x50   : > { %v2946_v21 = vld [vmem:[#allocation11 + $0xe8] sm:$0xff]  ;;  %v2945_v25 = vld [vmem:[#allocation11 + $0xe0] sm:$0xff]  ;;  %v2944_v29 = vld [vmem:[#allocation11 + $0xd8] sm:$0xff] }
  0x51   : > { %2980 = vmatpush.bf16.msra.mxu1 %v2898_v2  ;;  %2981 = vmatpush.bf16.msra.mxu2 %v2898_v2  ;;  %v2874_v22 = vld [vmem:[#allocation11 + $0x28] sm:$0xff]  ;;  %v2873_v26 = vld [vmem:[#allocation11 + $0x20] sm:$0xff]  ;;  %v2872_v34 = vld [vmem:[#allocation11 + $0x18] sm:$0xff]  ;;  %p3295_p9 = pneg %p3294_p8 }
  0x52   : > { %2982 = vmatpush.bf16.msra.mxu3 %v2898_v2  ;;  %762 = vmatpush.bf16.msra.mxu0 %v2898_v2  ;;  %v2970_v23 = vld [vmem:[#allocation11 + $0x128] sm:$0xff]  ;;  %v2969_v27 = vld [vmem:[#allocation11 + $0x120] sm:$0xff]  ;;  %v2968_v35 = vld [vmem:[#allocation11 + $0x118] sm:$0xff] }
  0x53   : > { %v2882_v30 = vld [vmem:[%s3592_s28 + $0x28] sm:$0xff]  ;;  %v2919_v36 = vld [vmem:[#allocation11 + $0x90] sm:$0xff]  ;;  %v2917_v44 = vld [vmem:[#allocation11 + $0x80] sm:$0xff] }
  0x54   : > { %v2886_v31 = vld [vmem:[%s3592_s28 + $0x48] sm:$0xff]  ;;  %v2943_v37 = vld [vmem:[#allocation11 + $0xd0] sm:$0xff]  ;;  %v2941_v45 = vld [vmem:[#allocation11 + $0xc0] sm:$0xff] }
  0x55   : > { %2983 = vmatpush.bf16.msra.mxu1 %v2897_v3  ;;  %2984 = vmatpush.bf16.msra.mxu2 %v2897_v3  ;;  %v2890_v32 = vld [vmem:[%s3592_s28 + $0x68] sm:$0xff]  ;;  %v2871_v38 = vld [vmem:[#allocation11 + $0x10] sm:$0xff]  ;;  %v2869_v46 = vld [vmem:[#allocation11] sm:$0xff] }
  0x56   : > { %2985 = vmatpush.bf16.msra.mxu3 %v2897_v3  ;;  %763 = vmatpush.bf16.msra.mxu0 %v2897_v3  ;;  %v2878_v33 = vld [vmem:[%s3592_s28 + $0x8] sm:$0xff]  ;;  %v2967_v39 = vld [vmem:[#allocation11 + $0x110] sm:$0xff]  ;;  %v2965_v47 = vld [vmem:[#allocation11 + $0x100] sm:$0xff] }
  0x57   : > { %v2918_v40 = vld [vmem:[#allocation11 + $0x88] sm:$0xff]  ;;  %v2883_v48 = vld [vmem:[%s3592_s28 + $0x30] sm:$0xff]  ;;  %v2884_v52 = vld [vmem:[%s3592_s28 + $0x38] sm:$0xff] }
  0x58   : > { %v2942_v41 = vld [vmem:[#allocation11 + $0xc8] sm:$0xff]  ;;  %v2887_v49 = vld [vmem:[%s3592_s28 + $0x50] sm:$0xff]  ;;  %v2888_v53 = vld [vmem:[%s3592_s28 + $0x58] sm:$0xff] }
  0x59   : > { %2986 = vmatpush.bf16.msra.mxu1 %v2896_v4  ;;  %2987 = vmatpush.bf16.msra.mxu2 %v2896_v4  ;;  %v2870_v42 = vld [vmem:[#allocation11 + $0x8] sm:$0xff]  ;;  %v2891_v50 = vld [vmem:[%s3592_s28 + $0x70] sm:$0xff]  ;;  %v2892_v54 = vld [vmem:[%s3592_s28 + $0x78] sm:$0xff] }
  0x5a   : > { %2988 = vmatpush.bf16.msra.mxu3 %v2896_v4  ;;  %764 = vmatpush.bf16.msra.mxu0 %v2896_v4  ;;  %v2966_v43 = vld [vmem:[#allocation11 + $0x108] sm:$0xff]  ;;  %v2879_v51 = vld [vmem:[%s3592_s28 + $0x10] sm:$0xff]  ;;  %v2880_v55 = vld [vmem:[%s3592_s28 + $0x18] sm:$0xff] }
  0x5b   : > { %v2853_v56 = vld [vmem:[%s3585_s13] sm:$0xff]  ;;  %v2854_v60 = vld [vmem:[%s3585_s13 + $0x8] sm:$0xff]  ;;  %v2855_v0 = vld [vmem:[%s3585_s13 + $0x10] sm:$0xff] }
  0x5c   : > { %v2901_v57 = vld [vmem:[%s3598_s14] sm:$0xff]  ;;  %v2902_v61 = vld [vmem:[%s3598_s14 + $0x8] sm:$0xff]  ;;  %v2903_v1 = vld [vmem:[%s3598_s14 + $0x10] sm:$0xff] }
  0x5d   : > { %2989 = vmatpush.bf16.msra.mxu1 %v2895_v5  ;;  %2990 = vmatpush.bf16.msra.mxu2 %v2895_v5  ;;  %v2925_v58 = vld [vmem:[%s3600_s9] sm:$0xff]  ;;  %v2926_v62 = vld [vmem:[%s3600_s9 + $0x8] sm:$0xff]  ;;  %v2927_v2 = vld [vmem:[%s3600_s9 + $0x10] sm:$0xff] }
  0x5e   : > { %2991 = vmatpush.bf16.msra.mxu3 %v2895_v5  ;;  %765 = vmatpush.bf16.msra.mxu0 %v2895_v5  ;;  %v2949_v59 = vld [vmem:[%s3606_s19] sm:$0xff]  ;;  %v2950_v63 = vld [vmem:[%s3606_s19 + $0x8] sm:$0xff]  ;;  %v2951_v3 = vld [vmem:[%s3606_s19 + $0x10] sm:$0xff] }
  0x5f   : > { %v2856_v4 = vld [vmem:[%s3585_s13 + $0x18] sm:$0xff] }
  0x60   : > { %v2904_v5 = vld [vmem:[%s3598_s14 + $0x18] sm:$0xff] }
  0x61   : > { %2992 = vmatpush.bf16.msra.mxu1 %v2894_v6  ;;  %2993 = vmatpush.bf16.msra.mxu2 %v2894_v6 }
  0x62   : > { %2994 = vmatpush.bf16.msra.mxu3 %v2894_v6  ;;  %766 = vmatpush.bf16.msra.mxu0 %v2894_v6  ;;  %v2928_v6 = vld [vmem:[%s3600_s9 + $0x18] sm:$0xff] }
  0x65   : > { %2995 = vmatpush.bf16.msra.mxu1 %v2893_v7  ;;  %2996 = vmatpush.bf16.msra.mxu2 %v2893_v7 }
  0x66   : > { %2997 = vmatpush.bf16.msra.mxu3 %v2893_v7  ;;  %767 = vmatpush.bf16.msra.mxu0 %v2893_v7  ;;  %v2952_v7 = vld [vmem:[%s3606_s19 + $0x18] sm:$0xff] }
  0x68   : > { %788 = vmatmul.bf16.vlgmr.msra.gmra.mxu1 %v2881_v10  ;;  %808 = vmatmul.bf16.vlgmr.msra.gmra.mxu2 %v2885_v11  ;;  %v2929_v11 = vld [vmem:[%s3600_s9 + $0x20] sm:$0xff] }
  0x69   : > { %1275 = vmatpush.bf16.msrb.mxu2 %v2924_v8  ;;  %828 = vmatmul.bf16.vlgmr.msra.gmra.mxu3 %v2889_v12  ;;  %v2857_v8 = vld [vmem:[%s3585_s13 + $0x20] sm:$0xff] }
  0x6a   : > { %1589 = vmatpush.bf16.msrb.mxu3 %v2948_v9  ;;  %768 = vmatmul.bf16.vlgmr.msra.gmra.mxu0 %v2877_v13  ;;  %v2905_v9 = vld [vmem:[%s3598_s14 + $0x20] sm:$0xff] }
  0x6b   : > { %993 = vmatpush.bf16.msrb.mxu1 %v2876_v14  ;;  %1903 = vmatpush.bf16.msrb.mxu0 %v2972_v15  ;;  %v2953_v12 = vld [vmem:[%s3606_s19 + $0x20] sm:$0xff] }
  0x6d   : > { %1276 = vmatpush.bf16.msrb.mxu2 %v2923_v16 }
  0x6e   : > { %1590 = vmatpush.bf16.msrb.mxu3 %v2947_v17 }
  0x6f   : > { %994 = vmatpush.bf16.msrb.mxu1 %v2875_v18  ;;  %1904 = vmatpush.bf16.msrb.mxu0 %v2971_v19 }
  0x71   : > { %1277 = vmatpush.bf16.msrb.mxu2 %v2922_v20  ;;  %v2858_v20 = vld [vmem:[%s3585_s13 + $0x28] sm:$0xff] }
  0x72   : > { %1591 = vmatpush.bf16.msrb.mxu3 %v2946_v21  ;;  %v2906_v21 = vld [vmem:[%s3598_s14 + $0x28] sm:$0xff] }
  0x73   : > { %995 = vmatpush.bf16.msrb.mxu1 %v2874_v22  ;;  %1905 = vmatpush.bf16.msrb.mxu0 %v2970_v23  ;;  %v2930_v23 = vld [vmem:[%s3600_s9 + $0x28] sm:$0xff] }
  0x75   : > { %1278 = vmatpush.bf16.msrb.mxu2 %v2921_v24  ;;  %v2954_v24 = vld [vmem:[%s3606_s19 + $0x28] sm:$0xff] }
  0x76   : > { %1592 = vmatpush.bf16.msrb.mxu3 %v2945_v25 }
  0x77   : > { %996 = vmatpush.bf16.msrb.mxu1 %v2873_v26  ;;  %1906 = vmatpush.bf16.msrb.mxu0 %v2969_v27 }
  0x78   : > { %793 = vmatmul.bf16.gmra.mxu1 %v2882_v30  ;;  %813 = vmatmul.bf16.gmra.mxu2 %v2886_v31 }
  0x79   : > { %1279 = vmatpush.bf16.msrb.mxu2 %v2920_v28  ;;  %833 = vmatmul.bf16.gmra.mxu3 %v2890_v32  ;;  %v2859_v32 = vld [vmem:[%s3585_s13 + $0x30] sm:$0xff] }
  0x7a   : > { %1593 = vmatpush.bf16.msrb.mxu3 %v2944_v29  ;;  %773 = vmatmul.bf16.gmra.mxu0 %v2878_v33  ;;  %v2907_v33 = vld [vmem:[%s3598_s14 + $0x30] sm:$0xff] }
  0x7b   : > { %997 = vmatpush.bf16.msrb.mxu1 %v2872_v34  ;;  %1907 = vmatpush.bf16.msrb.mxu0 %v2968_v35  ;;  %v2931_v35 = vld [vmem:[%s3600_s9 + $0x30] sm:$0xff] }
  0x7d   : > { %1280 = vmatpush.bf16.msrb.mxu2 %v2919_v36  ;;  %v2955_v36 = vld [vmem:[%s3606_s19 + $0x30] sm:$0xff] }
  0x7e   : > { %1594 = vmatpush.bf16.msrb.mxu3 %v2943_v37 }
  0x7f   : > { %998 = vmatpush.bf16.msrb.mxu1 %v2871_v38  ;;  %1908 = vmatpush.bf16.msrb.mxu0 %v2967_v39 }
  0x81   : > { %1281 = vmatpush.bf16.msrb.mxu2 %v2918_v40 }
  0x82   : > { %1595 = vmatpush.bf16.msrb.mxu3 %v2942_v41 }
  0x83   : > { %999 = vmatpush.bf16.msrb.mxu1 %v2870_v42  ;;  %1909 = vmatpush.bf16.msrb.mxu0 %v2966_v43 }
  0x85   : > { %1282 = vmatpush.bf16.msrb.mxu2 %v2917_v44  ;;  %v2860_v44 = vld [vmem:[%s3585_s13 + $0x38] sm:$0xff] }
  0x86   : > { %1596 = vmatpush.bf16.msrb.mxu3 %v2941_v45  ;;  %v2908_v45 = vld [vmem:[%s3598_s14 + $0x38] sm:$0xff] }
  0x87   : > { %1000 = vmatpush.bf16.msrb.mxu1 %v2869_v46  ;;  %1910 = vmatpush.bf16.msrb.mxu0 %v2965_v47  ;;  %v2932_v47 = vld [vmem:[%s3600_s9 + $0x38] sm:$0xff] }
  0x88   : > { %798 = vmatmul.bf16.gmra.mxu1 %v2883_v48  ;;  %818 = vmatmul.bf16.gmra.mxu2 %v2887_v49  ;;  %v2956_v48 = vld [vmem:[%s3606_s19 + $0x38] sm:$0xff] }
  0x89   : > { %838 = vmatmul.bf16.gmra.mxu3 %v2891_v50 }
  0x8a   : > { %778 = vmatmul.bf16.gmra.mxu0 %v2879_v51 }
  0x98   : > { %803 = vmatmul.bf16.gmra.mxu1 %v2884_v52  ;;  %823 = vmatmul.bf16.gmra.mxu2 %v2888_v53 }
  0x99   : > { %843 = vmatmul.bf16.gmra.mxu3 %v2892_v54 }
  0x9a   : > { %783 = vmatmul.bf16.gmra.mxu0 %v2880_v55 }
  0xa8   : > { %1001 = vmatmul.bf16.vlgmr.msrb.gmra.mxu1 %v2853_v56  ;;  %1283 = vmatmul.bf16.vlgmr.msrb.gmra.mxu2 %v2901_v57  ;;  %v2861_v56 = vld [vmem:[%s3585_s13 + $0x40] sm:$0xff] }
  0xa9   : > { %1597 = vmatmul.bf16.vlgmr.msrb.gmra.mxu3 %v2925_v58  ;;  %v2909_v57 = vld [vmem:[%s3598_s14 + $0x40] sm:$0xff] }
  0xaa   : > { %1911 = vmatmul.bf16.vlgmr.msrb.gmra.mxu0 %v2949_v59  ;;  %v2933_v59 = vld [vmem:[%s3600_s9 + $0x40] sm:$0xff] }
  0xb8   : > { %1006 = vmatmul.bf16.gmra.mxu1 %v2854_v60  ;;  %1288 = vmatmul.bf16.gmra.mxu2 %v2902_v61  ;;  %v2957_v60 = vld [vmem:[%s3606_s19 + $0x40] sm:$0xff] }
  0xb9   : > { %1602 = vmatmul.bf16.gmra.mxu3 %v2926_v62 }
  0xba   : > { %1916 = vmatmul.bf16.gmra.mxu0 %v2950_v63 }
  0xc8   : > { %1011 = vmatmul.bf16.gmra.mxu1 %v2855_v0  ;;  %1293 = vmatmul.bf16.gmra.mxu2 %v2903_v1 }
  0xc9   : > { %1607 = vmatmul.bf16.gmra.mxu3 %v2927_v2 }
  0xca   : > { %1921 = vmatmul.bf16.gmra.mxu0 %v2951_v3 }
  0xd8   : > { %1016 = vmatmul.bf16.gmra.mxu1 %v2856_v4  ;;  %1298 = vmatmul.bf16.gmra.mxu2 %v2904_v5  ;;  %v3732_v4 = vld [vmem:[%s3905_s6] ss:$0 sm:$0xff] }
  0xd9   : > { %1612 = vmatmul.bf16.gmra.mxu3 %v2928_v6 }
  0xda   : > { %1926 = vmatmul.bf16.gmra.mxu0 %v2952_v7 }
  0xe5   : > { %v3646_v10 = vpop.f32.mrf.mxu1 }
  0xe7   : > { %v3650_v13 = vpop.f32.mrf.mxu0 }
  0xe8   : > { %1021 = vmatmul.bf16.gmra.mxu1 %v2857_v8  ;;  %1303 = vmatmul.bf16.gmra.mxu2 %v2905_v9 }
  0xe9   : > { %1617 = vmatmul.bf16.gmra.mxu3 %v2929_v11 }
  0xea   : > { %1931 = vmatmul.bf16.gmra.mxu0 %v2953_v12 }
  0xeb   : > { %v3652_v14 = vpop.f32.mrf.mxu2 }
  0xec   : > { %v3654_v15 = vpop.f32.mrf.mxu3 }
  0xed   : > { %v3656_v16 = vpop.f32.mrf.mxu1 }
  0xef   : > { %v3658_v17 = vpop.f32.mrf.mxu0 }
  0xf3   : > { %v3660_v18 = vpop.f32.mrf.mxu2 }
  0xf4   : > { %v3662_v19 = vpop.f32.mrf.mxu3 }
  0xf5   : > { %v3666_v22 = vpop.f32.mrf.mxu1 }
  0xf7   : > { %v3670_v25 = vpop.f32.mrf.mxu0 }
  0xf8   : > { %1026 = vmatmul.bf16.gmra.mxu1 %v2858_v20  ;;  %1308 = vmatmul.bf16.gmra.mxu2 %v2906_v21  ;;  %v2862_v20 = vld [vmem:[%s3585_s13 + $0x48] sm:$0xff] }
  0xf9   : > { %1622 = vmatmul.bf16.gmra.mxu3 %v2930_v23  ;;  %v2910_v21 = vld [vmem:[%s3598_s14 + $0x48] sm:$0xff] }
  0xfa   : > { %1936 = vmatmul.bf16.gmra.mxu0 %v2954_v24  ;;  %v2934_v24 = vld [vmem:[%s3600_s9 + $0x48] sm:$0xff] }
  0xfb   : > { %v3672_v26 = vpop.f32.mrf.mxu2 }
  0xfc   : > { %v3674_v27 = vpop.f32.mrf.mxu3 }
  0xfd   : > { %v3676_v28 = vpop.f32.mrf.mxu1 }
  0xff   : > { %v3678_v29 = vpop.f32.mrf.mxu0 }
 0x103   : > { %v3680_v30 = vpop.f32.mrf.mxu2 }
 0x104   : > { %v3682_v31 = vpop.f32.mrf.mxu3 }
 0x105   : > { %v3686_v34 = vpop.f32.mrf.mxu1 }
 0x107   : > { %v3690_v37 = vpop.f32.mrf.mxu0 }
 0x108   : > { %1031 = vmatmul.bf16.gmra.mxu1 %v2859_v32  ;;  %1313 = vmatmul.bf16.gmra.mxu2 %v2907_v33  ;;  %v2958_v32 = vld [vmem:[%s3606_s19 + $0x48] sm:$0xff] }
 0x109   : > { %1627 = vmatmul.bf16.gmra.mxu3 %v2931_v35 }
 0x10a   : > { %1941 = vmatmul.bf16.gmra.mxu0 %v2955_v36 }
 0x10b   : > { %v3692_v38 = vpop.f32.mrf.mxu2 }
 0x10c   : > { %v3694_v39 = vpop.f32.mrf.mxu3 }
 0x10d   : > { %v3696_v40 = vpop.f32.mrf.mxu1 }
 0x10f   : > { %v3698_v41 = vpop.f32.mrf.mxu0 }
 0x113   : > { %v3700_v42 = vpop.f32.mrf.mxu2 }
 0x114   : > { %v3702_v43 = vpop.f32.mrf.mxu3 }
 0x115   : > { %v3706_v46 = vpop.f32.mrf.mxu1 }
 0x117   : > { %v3710_v49 = vpop.f32.mrf.mxu0 }
 0x118   : > { %1036 = vmatmul.bf16.gmra.mxu1 %v2860_v44  ;;  %1318 = vmatmul.bf16.gmra.mxu2 %v2908_v45 }
 0x119   : > { %1632 = vmatmul.bf16.gmra.mxu3 %v2932_v47 }
 0x11a   : > { %1946 = vmatmul.bf16.gmra.mxu0 %v2956_v48 }
 0x11b   : > { %v3712_v50 = vpop.f32.mrf.mxu2 }
 0x11c   : > { %v3714_v51 = vpop.f32.mrf.mxu3 }
 0x11d   : > { %v3716_v52 = vpop.f32.mrf.mxu1 }
 0x11f   : > { %v3718_v53 = vpop.f32.mrf.mxu0 }
 0x123   : > { %v3720_v54 = vpop.f32.mrf.mxu2 }
 0x124   : > { %v3722_v55 = vpop.f32.mrf.mxu3 }
 0x125   : > { %v1002_v58 = vpop.f32.mrf.mxu1 }
 0x126   : > { %v1003_v62 = vadd.f32 %v1002_v58, %v3650_v13 }
 0x127   : > { %v1912_v61 = vpop.f32.mrf.mxu0 }
 0x128   : > { %1041 = vmatmul.bf16.gmra.mxu1 %v2861_v56  ;;  %1323 = vmatmul.bf16.gmra.mxu2 %v2909_v57 }
 0x129   : > { %1637 = vmatmul.bf16.gmra.mxu3 %v2933_v59 }
 0x12a   : > { %1951 = vmatmul.bf16.gmra.mxu0 %v2957_v60 }
 0x12b   : > { %v1284_v63 = vpop.f32.mrf.mxu2 }
 0x12c   : > { %v1364_v0 = vadd.f32 %v1284_v63, %v1003_v62  ;;  %v1598_v1 = vpop.f32.mrf.mxu3 }
 0x12d   : > { %v1004_v2 = vpop.f32.mrf.mxu1 }
 0x12e   : > { %v1678_v3 = vadd.f32 %v1598_v1, %v1364_v0  ;;  %v1005_v8 = vadd.f32 %v1004_v2, %v3658_v17  ;;  %v2863_v2 = vld [vmem:[%s3585_s13 + $0x50] sm:$0xff] }
 0x12f   : > { %v1914_v5 = vpop.f32.mrf.mxu0 }
 0x130   : > { %v1992_v6 = vadd.f32 %v1912_v61, %v1678_v3  ;;  %v2911_v3 = vld [vmem:[%s3598_s14 + $0x50] sm:$0xff] }
 0x132   : > { %v2028_v7 = vadd.f32 %v3732_v4, %v1992_v6  ;;  %v2935_v6 = vld [vmem:[%s3600_s9 + $0x50] sm:$0xff] }
 0x133   : > { %v1286_v9 = vpop.f32.mrf.mxu2 }
 0x134   : > { %v2060_v11 = vmax.f32 %v2028_v7, 0.0  ;;  %v1365_v12 = vadd.f32 %v1286_v9, %v1005_v8  ;;  %v1600_v13 = vpop.f32.mrf.mxu3  ;;  %v2959_v7 = vld [vmem:[%s3606_s19 + $0x50] sm:$0xff] }
 0x135   : > { %v1007_v23 = vpop.f32.mrf.mxu1 }
 0x136   : > { %2092 = vst [vmem:[%s3741_s3] sm:$0xff] %v2060_v11  ;;  %v1679_v33 = vadd.f32 %v1600_v13, %v1365_v12  ;;  %v1008_v44 = vadd.f32 %v1007_v23, %v3670_v25 }
 0x137   : > { %v1917_v35 = vpop.f32.mrf.mxu0 }
 0x138   : > { %v1993_v36 = vadd.f32 %v1914_v5, %v1679_v33  ;;  %1046 = vmatmul.bf16.gmra.mxu1 %v2862_v20  ;;  %1328 = vmatmul.bf16.gmra.mxu2 %v2910_v21 }
 0x139   : > { %1642 = vmatmul.bf16.gmra.mxu3 %v2934_v24 }
 0x13a   : > { %1956 = vmatmul.bf16.gmra.mxu0 %v2958_v32  ;;  %v2029_v17 = vadd.f32 %v3732_v4, %v1993_v36 }
 0x13b   : > { %v1289_v45 = vpop.f32.mrf.mxu2 }
 0x13c   : > { %v2061_v47 = vmax.f32 %v2029_v17, 0.0  ;;  %v1366_v48 = vadd.f32 %v1289_v45, %v1008_v44  ;;  %v1603_v56 = vpop.f32.mrf.mxu3 }
 0x13d   : > { %v1009_v57 = vpop.f32.mrf.mxu1 }
 0x13e   : > { %2093 = vst [vmem:[%s3741_s3 + $0x8] sm:$0xff] %v2061_v47  ;;  %v1680_v58 = vadd.f32 %v1603_v56, %v1366_v48  ;;  %v1010_v62 = vadd.f32 %v1009_v57, %v3678_v29  ;;  %v2864_v48 = vld [vmem:[%s3585_s13 + $0x58] sm:$0xff] }
 0x13f   : > { %v1919_v59 = vpop.f32.mrf.mxu0  ;;  %v2912_v56 = vld [vmem:[%s3598_s14 + $0x58] sm:$0xff] }
 0x140   : > { %v1994_v60 = vadd.f32 %v1917_v35, %v1680_v58  ;;  %v2936_v58 = vld [vmem:[%s3600_s9 + $0x58] sm:$0xff] }
 0x142   : > { %v2030_v61 = vadd.f32 %v3732_v4, %v1994_v60 }
 0x143   : > { %v1291_v63 = vpop.f32.mrf.mxu2 }
 0x144   : > { %v2062_v25 = vmax.f32 %v2030_v61, 0.0  ;;  %v1367_v0 = vadd.f32 %v1291_v63, %v1010_v62  ;;  %v1605_v1 = vpop.f32.mrf.mxu3 }
 0x145   : > { %v1012_v5 = vpop.f32.mrf.mxu1 }
 0x146   : > { %2094 = vst [vmem:[%s3741_s3 + $0x10] sm:$0xff] %v2062_v25  ;;  %v1681_v8 = vadd.f32 %v1605_v1, %v1367_v0  ;;  %v1013_v12 = vadd.f32 %v1012_v5, %v3690_v37 }
 0x147   : > { %v1922_v9 = vpop.f32.mrf.mxu0 }
 0x148   : > { %v1995_v11 = vadd.f32 %v1919_v59, %v1681_v8  ;;  %1051 = vmatmul.bf16.gmra.mxu1 %v2863_v2  ;;  %1333 = vmatmul.bf16.gmra.mxu2 %v2911_v3  ;;  %v2960_v59 = vld [vmem:[%s3606_s19 + $0x58] sm:$0xff] }
 0x149   : > { %1647 = vmatmul.bf16.gmra.mxu3 %v2935_v6 }
 0x14a   : > { %1961 = vmatmul.bf16.gmra.mxu0 %v2959_v7  ;;  %v2031_v29 = vadd.f32 %v3732_v4, %v1995_v11 }
 0x14b   : > { %v1294_v13 = vpop.f32.mrf.mxu2 }
 0x14c   : > { %v2063_v20 = vmax.f32 %v2031_v29, 0.0  ;;  %v1368_v21 = vadd.f32 %v1294_v13, %v1013_v12  ;;  %v1608_v23 = vpop.f32.mrf.mxu3  ;;  %v2865_v13 = vld [vmem:[%s3585_s13 + $0x60] sm:$0xff] }
 0x14d   : > { %v1014_v24 = vpop.f32.mrf.mxu1 }
 0x14e   : > { %2095 = vst [vmem:[%s3741_s3 + $0x18] sm:$0xff] %v2063_v20  ;;  %v1682_v32 = vadd.f32 %v1608_v23, %v1368_v21  ;;  %v1015_v17 = vadd.f32 %v1014_v24, %v3698_v41  ;;  %v2913_v20 = vld [vmem:[%s3598_s14 + $0x60] sm:$0xff] }
 0x14f   : > { %v1924_v33 = vpop.f32.mrf.mxu0  ;;  %v2937_v23 = vld [vmem:[%s3600_s9 + $0x60] sm:$0xff] }
 0x150   : > { %v1996_v35 = vadd.f32 %v1922_v9, %v1682_v32  ;;  %v2961_v24 = vld [vmem:[%s3606_s19 + $0x60] sm:$0xff] }
 0x152   : > { %v2032_v36 = vadd.f32 %v3732_v4, %v1996_v35 }
 0x153   : > { %v1296_v44 = vpop.f32.mrf.mxu2 }
 0x154   : > { %v2064_v37 = vmax.f32 %v2032_v36, 0.0  ;;  %v1369_v45 = vadd.f32 %v1296_v44, %v1015_v17  ;;  %v1610_v47 = vpop.f32.mrf.mxu3 }
 0x155   : > { %v1017_v57 = vpop.f32.mrf.mxu1 }
 0x156   : > { %2096 = vst [vmem:[%s3741_s3 + $0x20] sm:$0xff] %v2064_v37  ;;  %v1683_v60 = vadd.f32 %v1610_v47, %v1369_v45  ;;  %v1018_v63 = vadd.f32 %v1017_v57, %v3710_v49 }
 0x157   : > { %v1927_v61 = vpop.f32.mrf.mxu0 }
 0x158   : > { %v1997_v62 = vadd.f32 %v1924_v33, %v1683_v60  ;;  %1056 = vmatmul.bf16.gmra.mxu1 %v2864_v48  ;;  %1338 = vmatmul.bf16.gmra.mxu2 %v2912_v56 }
 0x159   : > { %1652 = vmatmul.bf16.gmra.mxu3 %v2936_v58 }
 0x15a   : > { %1966 = vmatmul.bf16.gmra.mxu0 %v2960_v59  ;;  %v2033_v41 = vadd.f32 %v3732_v4, %v1997_v62 }
 0x15b   : > { %v1299_v25 = vpop.f32.mrf.mxu2 }
 0x15c   : > { %v2065_v0 = vmax.f32 %v2033_v41, 0.0  ;;  %v1370_v1 = vadd.f32 %v1299_v25, %v1018_v63  ;;  %v1613_v2 = vpop.f32.mrf.mxu3  ;;  %v2866_v41 = vld [vmem:[%s3585_s13 + $0x68] sm:$0xff] }
 0x15d   : > { %v1019_v3 = vpop.f32.mrf.mxu1  ;;  %v2914_v63 = vld [vmem:[%s3598_s14 + $0x68] sm:$0xff] }
 0x15e   : > { %2097 = vst [vmem:[%s3741_s3 + $0x28] sm:$0xff] %v2065_v0  ;;  %v1684_v5 = vadd.f32 %v1613_v2, %v1370_v1  ;;  %v1020_v9 = vadd.f32 %v1019_v3, %v3718_v53  ;;  %v2938_v0 = vld [vmem:[%s3600_s9 + $0x68] sm:$0xff] }
 0x15f   : > { %v1929_v6 = vpop.f32.mrf.mxu0  ;;  %v2962_v1 = vld [vmem:[%s3606_s19 + $0x68] sm:$0xff] }
 0x160   : > { %v1998_v7 = vadd.f32 %v1927_v61, %v1684_v5 }
 0x162   : > { %v2034_v8 = vadd.f32 %v3732_v4, %v1998_v7 }
 0x163   : > { %v1301_v11 = vpop.f32.mrf.mxu2 }
 0x164   : > { %v2066_v49 = vmax.f32 %v2034_v8, 0.0  ;;  %v1371_v29 = vadd.f32 %v1301_v11, %v1020_v9  ;;  %v1615_v12 = vpop.f32.mrf.mxu3 }
 0x165   : > { %v1022_v21 = vpop.f32.mrf.mxu1 }
 0x166   : > { %2098 = vst [vmem:[%s3741_s3 + $0x30] sm:$0xff] %v2066_v49  ;;  %v1685_v32 = vadd.f32 %v1615_v12, %v1371_v29  ;;  %v1023_v36 = vadd.f32 %v1022_v21, %v3646_v10 }
 0x167   : > { %v1932_v33 = vpop.f32.mrf.mxu0 }
 0x168   : > { %v1999_v35 = vadd.f32 %v1929_v6, %v1685_v32  ;;  %1061 = vmatmul.bf16.gmra.mxu1 %v2865_v13  ;;  %1343 = vmatmul.bf16.gmra.mxu2 %v2913_v20 }
 0x169   : > { %1657 = vmatmul.bf16.gmra.mxu3 %v2937_v23 }
 0x16a   : > { %1971 = vmatmul.bf16.gmra.mxu0 %v2961_v24  ;;  %v2035_v53 = vadd.f32 %v3732_v4, %v1999_v35  ;;  %v2915_v35 = vld [vmem:[%s3598_s14 + $0x70] sm:$0xff] }
 0x16b   : > { %v1304_v17 = vpop.f32.mrf.mxu2 }
 0x16c   : > { %v2067_v44 = vmax.f32 %v2035_v53, 0.0  ;;  %v1372_v37 = vadd.f32 %v1304_v17, %v1023_v36  ;;  %v1618_v45 = vpop.f32.mrf.mxu3  ;;  %v2939_v36 = vld [vmem:[%s3600_s9 + $0x70] sm:$0xff] }
 0x16d   : > { %v1024_v47 = vpop.f32.mrf.mxu1  ;;  %v2963_v17 = vld [vmem:[%s3606_s19 + $0x70] sm:$0xff] }
 0x16e   : > { %2099 = vst [vmem:[%s3741_s3 + $0x38] sm:$0xff] %v2067_v44  ;;  %v1686_v48 = vadd.f32 %v1618_v45, %v1372_v37  ;;  %v1025_v59 = vadd.f32 %v1024_v47, %v3656_v16 }
 0x16f   : > { %v1934_v56 = vpop.f32.mrf.mxu0 }
 0x170   : > { %v2000_v57 = vadd.f32 %v1932_v33, %v1686_v48  ;;  %v2867_v33 = vld [vmem:[%s3585_s13 + $0x70] sm:$0xff] }
 0x172   : > { %v2036_v58 = vadd.f32 %v3732_v4, %v2000_v57 }
 0x173   : > { %v1306_v60 = vpop.f32.mrf.mxu2 }
 0x174   : > { %v2068_v10 = vmax.f32 %v2036_v58, 0.0  ;;  %v1373_v61 = vadd.f32 %v1306_v60, %v1025_v59  ;;  %v1620_v62 = vpop.f32.mrf.mxu3 }
 0x175   : > { %v1027_v25 = vpop.f32.mrf.mxu1 }
 0x176   : > { %2100 = vst [vmem:[%s3741_s3 + $0x40] sm:$0xff] %v2068_v10  ;;  %v1687_v2 = vadd.f32 %v1620_v62, %v1373_v61  ;;  %v1028_v6 = vadd.f32 %v1027_v25, %v3666_v22 }
 0x177   : > { %v1937_v3 = vpop.f32.mrf.mxu0 }
 0x178   : > { %v2001_v5 = vadd.f32 %v1934_v56, %v1687_v2  ;;  %1066 = vmatmul.bf16.gmra.mxu1 %v2866_v41  ;;  %1348 = vmatmul.bf16.gmra.mxu2 %v2914_v63  ;;  %v2916_v2 = vld [vmem:[%s3598_s14 + $0x78] sm:$0xff] }
 0x179   : > { %1662 = vmatmul.bf16.gmra.mxu3 %v2938_v0 }
 0x17a   : > { %1976 = vmatmul.bf16.gmra.mxu0 %v2962_v1  ;;  %v2037_v16 = vadd.f32 %v3732_v4, %v2001_v5  ;;  %v2868_v1 = vld [vmem:[%s3585_s13 + $0x78] sm:$0xff]  ;;  %s3296_s13 = scalar_lea.hbm %s3906_s7, 512 }
 0x17b   : > { %v1309_v7 = vpop.f32.mrf.mxu2  ;;  %v2940_v5 = vld [vmem:[%s3600_s9 + $0x78] sm:$0xff]  ;;  %p3298_p11 = scmp.lt.s32.totalorder %s3296_s13, %s3292_s17 }
 0x17c   : > { %v2069_v8 = vmax.f32 %v2037_v16, 0.0  ;;  %v1374_v9 = vadd.f32 %v1309_v7, %v1028_v6  ;;  %v1623_v11 = vpop.f32.mrf.mxu3  ;;  %v2964_v16 = vld [vmem:[%s3606_s19 + $0x78] sm:$0xff] }
 0x17d   : > { %v1029_v49 = vpop.f32.mrf.mxu1  ;;  %p3299_p12 = por %p3298_p11, %p3297_p10 }
 0x17e   : > { %2101 = vst [vmem:[%s3741_s3 + $0x48] sm:$0xff] %v2069_v8  ;;  %v1688_v29 = vadd.f32 %v1623_v11, %v1374_v9  ;;  %v1030_v21 = vadd.f32 %v1029_v49, %v3676_v28 }
 0x17f   : > { %v1939_v12 = vpop.f32.mrf.mxu0  ;;  %p3300_p13 = pnand %p3299_p12, %p3295_p9 }
 0x180   : > { %v2002_v13 = vadd.f32 %v1937_v3, %v1688_v29 }
 0x182   : > { %v2038_v20 = vadd.f32 %v3732_v4, %v2002_v13 }
 0x183   : > { %v1311_v23 = vpop.f32.mrf.mxu2 }
 0x184   : > { %v2070_v22 = vmax.f32 %v2038_v20, 0.0  ;;  %v1375_v24 = vadd.f32 %v1311_v23, %v1030_v21  ;;  %v1625_v32 = vpop.f32.mrf.mxu3 }
 0x185   : > { %v1032_v53 = vpop.f32.mrf.mxu1 }
 0x186   : > { %2102 = vst [vmem:[%s3741_s3 + $0x50] sm:$0xff] %v2070_v22  ;;  %v1689_v44 = vadd.f32 %v1625_v32, %v1375_v24  ;;  %v1033_v47 = vadd.f32 %v1032_v53, %v3686_v34 }
 0x187   : > { %v1942_v37 = vpop.f32.mrf.mxu0 }
 0x188   : > { %v2003_v45 = vadd.f32 %v1939_v12, %v1689_v44  ;;  %1071 = vmatmul.bf16.gmra.mxu1 %v2867_v33  ;;  %1353 = vmatmul.bf16.gmra.mxu2 %v2915_v35 }
 0x189   : > { %1667 = vmatmul.bf16.gmra.mxu3 %v2939_v36 }
 0x18a   : > { %1981 = vmatmul.bf16.gmra.mxu0 %v2963_v17  ;;  %v2039_v28 = vadd.f32 %v3732_v4, %v2003_v45 }
 0x18b   : > { %v1314_v48 = vpop.f32.mrf.mxu2 }
 0x18c   : > { %v2071_v56 = vmax.f32 %v2039_v28, 0.0  ;;  %v1376_v57 = vadd.f32 %v1314_v48, %v1033_v47  ;;  %v1628_v58 = vpop.f32.mrf.mxu3 }
 0x18d   : > { %v1034_v59 = vpop.f32.mrf.mxu1 }
 0x18e   : > { %2103 = vst [vmem:[%s3741_s3 + $0x58] sm:$0xff] %v2071_v56  ;;  %v1690_v60 = vadd.f32 %v1628_v58, %v1376_v57  ;;  %v1035_v41 = vadd.f32 %v1034_v59, %v3696_v40 }
 0x18f   : > { %v1944_v10 = vpop.f32.mrf.mxu0 }
 0x190   : > { %v2004_v61 = vadd.f32 %v1942_v37, %v1690_v60 }
 0x192   : > { %v2040_v62 = vadd.f32 %v3732_v4, %v2004_v61 }
 0x193   : > { %v1316_v63 = vpop.f32.mrf.mxu2 }
 0x194   : > { %v2072_v34 = vmax.f32 %v2040_v62, 0.0  ;;  %v1377_v25 = vadd.f32 %v1316_v63, %v1035_v41  ;;  %v1630_v0 = vpop.f32.mrf.mxu3 }
 0x195   : > { %v1037_v3 = vpop.f32.mrf.mxu1 }
 0x196   : > { %2104 = vst [vmem:[%s3741_s3 + $0x60] sm:$0xff] %v2072_v34  ;;  %v1691_v6 = vadd.f32 %v1630_v0, %v1377_v25  ;;  %v1038_v9 = vadd.f32 %v1037_v3, %v3706_v46 }
 0x197   : > { %v1947_v7 = vpop.f32.mrf.mxu0 }
 0x198   : > { %v2005_v8 = vadd.f32 %v1944_v10, %v1691_v6  ;;  %1076 = vmatmul.bf16.gmra.mxu1 %v2868_v1  ;;  %1358 = vmatmul.bf16.gmra.mxu2 %v2916_v2 }
 0x199   : > { %1672 = vmatmul.bf16.gmra.mxu3 %v2940_v5 }
 0x19a   : > { %1986 = vmatmul.bf16.gmra.mxu0 %v2964_v16  ;;  %v2041_v40 = vadd.f32 %v3732_v4, %v2005_v8 }
 0x19b   : > { %v1319_v11 = vpop.f32.mrf.mxu2 }
 0x19c   : > { %v2073_v49 = vmax.f32 %v2041_v40, 0.0  ;;  %v1378_v29 = vadd.f32 %v1319_v11, %v1038_v9  ;;  %v1633_v12 = vpop.f32.mrf.mxu3 }
 0x19d   : > { %v1039_v13 = vpop.f32.mrf.mxu1 }
 0x19e   : > { %2105 = vst [vmem:[%s3741_s3 + $0x68] sm:$0xff] %v2073_v49  ;;  %v1692_v20 = vadd.f32 %v1633_v12, %v1378_v29  ;;  %v1040_v24 = vadd.f32 %v1039_v13, %v3716_v52 }
 0x19f   : > { %v1949_v21 = vpop.f32.mrf.mxu0 }
 0x1a0   : > { %v2006_v23 = vadd.f32 %v1947_v7, %v1692_v20 }
 0x1a2   : > { %v2042_v22 = vadd.f32 %v3732_v4, %v2006_v23 }
 0x1a3   : > { %v1321_v32 = vpop.f32.mrf.mxu2 }
 0x1a4   : > { %v2074_v33 = vmax.f32 %v2042_v22, 0.0  ;;  %v1379_v35 = vadd.f32 %v1321_v32, %v1040_v24  ;;  %v1635_v53 = vpop.f32.mrf.mxu3 }
 0x1a5   : > { %v1042_v46 = vpop.f32.mrf.mxu1 }
 0x1a6   : > { %2106 = vst [vmem:[%s3741_s3 + $0x70] sm:$0xff] %v2074_v33  ;;  %v1693_v36 = vadd.f32 %v1635_v53, %v1379_v35  ;;  %v1043_v45 = vadd.f32 %v1042_v46, %v3652_v14 }
 0x1a7   : > { %v1952_v17 = vpop.f32.mrf.mxu0 }
 0x1a8   : > { %v2007_v44 = vadd.f32 %v1949_v21, %v1693_v36 }
 0x1aa   : > { %v2043_v37 = vadd.f32 %v3732_v4, %v2007_v44 }
 0x1ab   : > { %v1324_v28 = vpop.f32.mrf.mxu2 }
 0x1ac   : > { %v2075_v47 = vmax.f32 %v2043_v37, 0.0  ;;  %v1380_v48 = vadd.f32 %v1324_v28, %v1043_v45  ;;  %v1638_v56 = vpop.f32.mrf.mxu3 }
 0x1ad   : > { %v1044_v52 = vpop.f32.mrf.mxu1 }
 0x1ae   : > { %2107 = vst [vmem:[%s3741_s3 + $0x78] sm:$0xff] %v2075_v47  ;;  %v1694_v57 = vadd.f32 %v1638_v56, %v1380_v48  ;;  %v1045_v10 = vadd.f32 %v1044_v52, %v3660_v18 }
 0x1af   : > { %v1954_v58 = vpop.f32.mrf.mxu0 }
 0x1b0   : > { %v2008_v59 = vadd.f32 %v1952_v17, %v1694_v57 }
 0x1b2   : > { %v2044_v60 = vadd.f32 %v3732_v4, %v2008_v59 }
 0x1b3   : > { %v1326_v61 = vpop.f32.mrf.mxu2 }
 0x1b4   : > { %v2076_v62 = vmax.f32 %v2044_v60, 0.0  ;;  %v1381_v41 = vadd.f32 %v1326_v61, %v1045_v10  ;;  %v1640_v63 = vpop.f32.mrf.mxu3 }
 0x1b5   : > { %v1047_v14 = vpop.f32.mrf.mxu1 }
 0x1b6   : > { %2108 = vst [vmem:[%s3741_s3 + $0x80] sm:$0xff] %v2076_v62  ;;  %v1695_v34 = vadd.f32 %v1640_v63, %v1381_v41  ;;  %v1048_v2 = vadd.f32 %v1047_v14, %v3672_v26 }
 0x1b7   : > { %v1957_v25 = vpop.f32.mrf.mxu0 }
 0x1b8   : > { %v2009_v0 = vadd.f32 %v1954_v58, %v1695_v34 }
 0x1ba   : > { %v2045_v1 = vadd.f32 %v3732_v4, %v2009_v0 }
 0x1bb   : > { %v1329_v3 = vpop.f32.mrf.mxu2 }
 0x1bc   : > { %v2077_v5 = vmax.f32 %v2045_v1, 0.0  ;;  %v1382_v16 = vadd.f32 %v1329_v3, %v1048_v2  ;;  %v1643_v6 = vpop.f32.mrf.mxu3 }
 0x1bd   : > { %v1049_v18 = vpop.f32.mrf.mxu1 }
 0x1be   : > { %2109 = vst [vmem:[%s3741_s3 + $0x88] sm:$0xff] %v2077_v5  ;;  %v1696_v7 = vadd.f32 %v1643_v6, %v1382_v16  ;;  %v1050_v11 = vadd.f32 %v1049_v18, %v3680_v30 }
 0x1bf   : > { %v1959_v8 = vpop.f32.mrf.mxu0 }
 0x1c0   : > { %v2010_v40 = vadd.f32 %v1957_v25, %v1696_v7 }
 0x1c2   : > { %v2046_v9 = vadd.f32 %v3732_v4, %v2010_v40 }
 0x1c3   : > { %v1331_v49 = vpop.f32.mrf.mxu2 }
 0x1c4   : > { %v2078_v29 = vmax.f32 %v2046_v9, 0.0  ;;  %v1383_v12 = vadd.f32 %v1331_v49, %v1050_v11  ;;  %v1645_v13 = vpop.f32.mrf.mxu3 }
 0x1c5   : > { %v1052_v26 = vpop.f32.mrf.mxu1 }
 0x1c6   : > { %2110 = vst [vmem:[%s3741_s3 + $0x90] sm:$0xff] %v2078_v29  ;;  %v1697_v20 = vadd.f32 %v1645_v13, %v1383_v12  ;;  %v1053_v24 = vadd.f32 %v1052_v26, %v3692_v38 }
 0x1c7   : > { %v1962_v21 = vpop.f32.mrf.mxu0 }
 0x1c8   : > { %v2011_v23 = vadd.f32 %v1959_v8, %v1697_v20 }
 0x1ca   : > { %v2047_v22 = vadd.f32 %v3732_v4, %v2011_v23 }
 0x1cb   : > { %v1334_v32 = vpop.f32.mrf.mxu2 }
 0x1cc   : > { %v2079_v33 = vmax.f32 %v2047_v22, 0.0  ;;  %v1384_v35 = vadd.f32 %v1334_v32, %v1053_v24  ;;  %v1648_v53 = vpop.f32.mrf.mxu3 }
 0x1cd   : > { %v1054_v30 = vpop.f32.mrf.mxu1 }
 0x1ce   : > { %2111 = vst [vmem:[%s3741_s3 + $0x98] sm:$0xff] %v2079_v33  ;;  %v1698_v46 = vadd.f32 %v1648_v53, %v1384_v35  ;;  %v1055_v37 = vadd.f32 %v1054_v30, %v3700_v42 }
 0x1cf   : > { %v1964_v36 = vpop.f32.mrf.mxu0 }
 0x1d0   : > { %v2012_v17 = vadd.f32 %v1962_v21, %v1698_v46 }
 0x1d2   : > { %v2048_v44 = vadd.f32 %v3732_v4, %v2012_v17 }
 0x1d3   : > { %v1336_v45 = vpop.f32.mrf.mxu2 }
 0x1d4   : > { %v2080_v28 = vmax.f32 %v2048_v44, 0.0  ;;  %v1385_v47 = vadd.f32 %v1336_v45, %v1055_v37  ;;  %v1650_v48 = vpop.f32.mrf.mxu3 }
 0x1d5   : > { %v1057_v38 = vpop.f32.mrf.mxu1 }
 0x1d6   : > { %2112 = vst [vmem:[%s3741_s3 + $0xa0] sm:$0xff] %v2080_v28  ;;  %v1699_v56 = vadd.f32 %v1650_v48, %v1385_v47  ;;  %v1058_v59 = vadd.f32 %v1057_v38, %v3712_v50 }
 0x1d7   : > { %v1967_v52 = vpop.f32.mrf.mxu0 }
 0x1d8   : > { %v2013_v57 = vadd.f32 %v1964_v36, %v1699_v56 }
 0x1da   : > { %v2049_v58 = vadd.f32 %v3732_v4, %v2013_v57 }
 0x1db   : > { %v1339_v60 = vpop.f32.mrf.mxu2 }
 0x1dc   : > { %v2081_v10 = vmax.f32 %v2049_v58, 0.0  ;;  %v1386_v61 = vadd.f32 %v1339_v60, %v1058_v59  ;;  %v1653_v62 = vpop.f32.mrf.mxu3 }
 0x1dd   : > { %v1059_v42 = vpop.f32.mrf.mxu1 }
 0x1de   : > { %2113 = vst [vmem:[%s3741_s3 + $0xa8] sm:$0xff] %v2081_v10  ;;  %v1700_v41 = vadd.f32 %v1653_v62, %v1386_v61  ;;  %v1060_v25 = vadd.f32 %v1059_v42, %v3720_v54 }
 0x1df   : > { %v1969_v63 = vpop.f32.mrf.mxu0 }
 0x1e0   : > { %v2014_v14 = vadd.f32 %v1967_v52, %v1700_v41 }
 0x1e2   : > { %v2050_v34 = vadd.f32 %v3732_v4, %v2014_v14 }
 0x1e3   : > { %v1341_v0 = vpop.f32.mrf.mxu2 }
 0x1e4   : > { %v2082_v1 = vmax.f32 %v2050_v34, 0.0  ;;  %v1387_v2 = vadd.f32 %v1341_v0, %v1060_v25  ;;  %v1655_v3 = vpop.f32.mrf.mxu3 }
 0x1e5   : > { %v1062_v50 = vpop.f32.mrf.mxu1 }
 0x1e6   : > { %2114 = vst [vmem:[%s3741_s3 + $0xb0] sm:$0xff] %v2082_v1  ;;  %v1701_v5 = vadd.f32 %v1655_v3, %v1387_v2  ;;  %v1063_v7 = vadd.f32 %v1062_v50, %v3654_v15 }
 0x1e7   : > { %v1972_v16 = vpop.f32.mrf.mxu0 }
 0x1e8   : > { %v2015_v6 = vadd.f32 %v1969_v63, %v1701_v5 }
 0x1ea   : > { %v2051_v18 = vadd.f32 %v3732_v4, %v2015_v6 }
 0x1eb   : > { %v1344_v8 = vpop.f32.mrf.mxu2 }
 0x1ec   : > { %v2083_v40 = vmax.f32 %v2051_v18, 0.0  ;;  %v1388_v9 = vadd.f32 %v1344_v8, %v1063_v7  ;;  %v1658_v11 = vpop.f32.mrf.mxu3 }
 0x1ed   : > { %v1064_v54 = vpop.f32.mrf.mxu1 }
 0x1ee   : > { %2115 = vst [vmem:[%s3741_s3 + $0xb8] sm:$0xff] %v2083_v40  ;;  %v1702_v49 = vadd.f32 %v1658_v11, %v1388_v9  ;;  %v1065_v26 = vadd.f32 %v1064_v54, %v3662_v19 }
 0x1ef   : > { %v1974_v29 = vpop.f32.mrf.mxu0 }
 0x1f0   : > { %v2016_v12 = vadd.f32 %v1972_v16, %v1702_v49 }
 0x1f2   : > { %v2052_v13 = vadd.f32 %v3732_v4, %v2016_v12 }
 0x1f3   : > { %v1346_v20 = vpop.f32.mrf.mxu2 }
 0x1f4   : > { %v2084_v21 = vmax.f32 %v2052_v13, 0.0  ;;  %v1389_v23 = vadd.f32 %v1346_v20, %v1065_v26  ;;  %v1660_v22 = vpop.f32.mrf.mxu3 }
 0x1f5   : > { %v1067_v15 = vpop.f32.mrf.mxu1 }
 0x1f6   : > { %2116 = vst [vmem:[%s3741_s3 + $0xc0] sm:$0xff] %v2084_v21  ;;  %v1703_v24 = vadd.f32 %v1660_v22, %v1389_v23  ;;  %v1068_v53 = vadd.f32 %v1067_v15, %v3674_v27 }
 0x1f7   : > { %v1977_v32 = vpop.f32.mrf.mxu0 }
 0x1f8   : > { %v2017_v33 = vadd.f32 %v1974_v29, %v1703_v24 }
 0x1fa   : > { %v2053_v35 = vadd.f32 %v3732_v4, %v2017_v33 }
 0x1fb   : > { %v1349_v30 = vpop.f32.mrf.mxu2 }
 0x1fc   : > { %v2085_v46 = vmax.f32 %v2053_v35, 0.0  ;;  %v1390_v36 = vadd.f32 %v1349_v30, %v1068_v53  ;;  %v1663_v17 = vpop.f32.mrf.mxu3 }
 0x1fd   : > { %v1069_v19 = vpop.f32.mrf.mxu1 }
 0x1fe   : > { %2117 = vst [vmem:[%s3741_s3 + $0xc8] sm:$0xff] %v2085_v46  ;;  %v1704_v44 = vadd.f32 %v1663_v17, %v1390_v36  ;;  %v1070_v47 = vadd.f32 %v1069_v19, %v3682_v31 }
 0x1ff   : > { %v1979_v37 = vpop.f32.mrf.mxu0 }
 0x200   : > { %v2018_v45 = vadd.f32 %v1977_v32, %v1704_v44 }
 0x202   : > { %v2054_v28 = vadd.f32 %v3732_v4, %v2018_v45 }
 0x203   : > { %v1351_v48 = vpop.f32.mrf.mxu2 }
 0x204   : > { %v2086_v38 = vmax.f32 %v2054_v28, 0.0  ;;  %v1391_v56 = vadd.f32 %v1351_v48, %v1070_v47  ;;  %v1665_v52 = vpop.f32.mrf.mxu3 }
 0x205   : > { %v1072_v27 = vpop.f32.mrf.mxu1 }
 0x206   : > { %2118 = vst [vmem:[%s3741_s3 + $0xd0] sm:$0xff] %v2086_v38  ;;  %v1705_v57 = vadd.f32 %v1665_v52, %v1391_v56  ;;  %v1073_v10 = vadd.f32 %v1072_v27, %v3694_v39 }
 0x207   : > { %v1982_v59 = vpop.f32.mrf.mxu0 }
 0x208   : > { %v2019_v58 = vadd.f32 %v1979_v37, %v1705_v57 }
 0x20a   : > { %v2055_v60 = vadd.f32 %v3732_v4, %v2019_v58 }
 0x20b   : > { %v1354_v61 = vpop.f32.mrf.mxu2 }
 0x20c   : > { %v2087_v62 = vmax.f32 %v2055_v60, 0.0  ;;  %v1392_v42 = vadd.f32 %v1354_v61, %v1073_v10  ;;  %v1668_v41 = vpop.f32.mrf.mxu3 }
 0x20d   : > { %v1074_v31 = vpop.f32.mrf.mxu1 }
 0x20e   : > { %2119 = vst [vmem:[%s3741_s3 + $0xd8] sm:$0xff] %v2087_v62  ;;  %v1706_v63 = vadd.f32 %v1668_v41, %v1392_v42  ;;  %v1075_v25 = vadd.f32 %v1074_v31, %v3702_v43 }
 0x20f   : > { %v1984_v0 = vpop.f32.mrf.mxu0 }
 0x210   : > { %v2020_v14 = vadd.f32 %v1982_v59, %v1706_v63 }
 0x212   : > { %v2056_v34 = vadd.f32 %v3732_v4, %v2020_v14 }
 0x213   : > { %v1356_v1 = vpop.f32.mrf.mxu2 }
 0x214   : > { %v2088_v2 = vmax.f32 %v2056_v34, 0.0  ;;  %v1393_v3 = vadd.f32 %v1356_v1, %v1075_v25  ;;  %v1670_v50 = vpop.f32.mrf.mxu3 }
 0x215   : > { %v1077_v39 = vpop.f32.mrf.mxu1 }
 0x216   : > { %2120 = vst [vmem:[%s3741_s3 + $0xe0] sm:$0xff] %v2088_v2  ;;  %v1707_v5 = vadd.f32 %v1670_v50, %v1393_v3  ;;  %v1078_v18 = vadd.f32 %v1077_v39, %v3714_v51 }
 0x217   : > { %v1987_v9 = vpop.f32.mrf.mxu0 }
 0x218   : > { %v2021_v16 = vadd.f32 %v1984_v0, %v1707_v5 }
 0x21a   : > { %v2057_v6 = vadd.f32 %v3732_v4, %v2021_v16 }
 0x21b   : > { %v1359_v7 = vpop.f32.mrf.mxu2 }
 0x21c   : > { %v2089_v8 = vmax.f32 %v2057_v6, 0.0  ;;  %v1394_v40 = vadd.f32 %v1359_v7, %v1078_v18  ;;  %v1673_v43 = vpop.f32.mrf.mxu3 }
 0x21d   : > { %v1079_v54 = vpop.f32.mrf.mxu1 }
 0x21e   : > { %2121 = vst [vmem:[%s3741_s3 + $0xe8] sm:$0xff] %v2089_v8  ;;  %v1708_v11 = vadd.f32 %v1673_v43, %v1394_v40  ;;  %v1080_v12 = vadd.f32 %v1079_v54, %v3722_v55 }
 0x21f   : > { %v1989_v23 = vpop.f32.mrf.mxu0 }
 0x220   : > { %v2022_v49 = vadd.f32 %v1987_v9, %v1708_v11 }
 0x222   : > { %v2058_v29 = vadd.f32 %v3732_v4, %v2022_v49 }
 0x223   : > { %v1361_v13 = vpop.f32.mrf.mxu2 }
 0x224   : > { %v2090_v51 = vmax.f32 %v2058_v29, 0.0  ;;  %v1395_v26 = vadd.f32 %v1361_v13, %v1080_v12  ;;  %v1675_v20 = vpop.f32.mrf.mxu3 }
 0x226   : > { %2122 = vst [vmem:[%s3741_s3 + $0xf0] sm:$0xff] %v2090_v51  ;;  %v1709_v21 = vadd.f32 %v1675_v20, %v1395_v26 }
 0x228   : > { %v2023_v22 = vadd.f32 %v1989_v23, %v1709_v21 }
 0x22a   : > { %v2059_v55 = vadd.f32 %v3732_v4, %v2023_v22 }
 0x22c   : > { %v2091_v15 = vmax.f32 %v2059_v55, 0.0 }
 0x22e   : > { %2123 = vst [vmem:[%s3741_s3 + $0xf8] sm:$0xff] %v2091_v15 }
 0x22f   : > { %3303 = shalt.err (!%p3300_p13)
}
 0x230   : > { %s3375_s0 = smov 128   ;;  %s3376_s28 = smov 8  }
 0x231   : > { %3012 = dma.vmem_to_hbm [thread:$0]  (%p3521_p0), %s2139_s23, 4096, %s2141_s18, %s2125_s27, %s3375_s0, %s3375_s0, %s3376_s28  }
 0x232 PF: > { %s3941_s22 = sld [smem:[#allocation21_spill]]  ;;  %s2155_s9 = sand.u32 1, %s3350_s24  }
 0x233   : > { %p3035_p3 = pnand %p2339_p4, %p3525_p2  ;;  %s2156_s19 = scalar_lea.sflag [#allocation4], %s2155_s9 }
 0x235   : > { %p3036_p5 = pneg %p3035_p3 }
 0x237   : > { %3345 = dma.done.wait (%p3036_p5), %s2156_s19, 4096  }
 0x238   : > { %3347 = vsyncadd (%p3036_p5), %s2156_s19, 4294963200  ;;  %s30_s29 = sadd.s32 1, %s3941_s22   ;;  %s3942_s20 = sld [smem:[#allocation19_spill]] }
 0x239   : > { %p27_p1 = scmp.ge.s32.totalorder %s30_s29, 4   ;;  %s3943_s26 = sld [smem:[#allocation23_spill]] }
 0x23a   : > { %s3944_s27 = sld [smem:[#allocation20_spill]]  ;;  %s3946_s24 = smov %s3354_s25 }
 0x23b   : > { %s3945_s28 = sld [smem:[#allocation22_spill]]  ;;  %29 = sbr.rel (!%p27_p1) target bundleno = 16 (0x10), region = 153 }
 0x23e   : > { %s3947_s25 = smov %s3942_s20 }
 0x240   :  { %2162 = vsyncpa [#allocation3], 1 }
 0x241   :  { %2164 = vsyncpa [#allocation3 + $0x1], 1 }
 0x242   :  { %2165 = vsyncpa [#allocation6], 1 }
 0x243   :  { %2167 = vsyncpa [#allocation6 + $0x1], 1 }
 0x244   :  { %2168 = vsyncpa [#allocation9], 1 }
 0x245   :  { %2170 = vsyncpa [#allocation9 + $0x1], 1 }
 0x246   :  { %2171 = vsyncpa [#allocation12], 1 }
 0x247   :  { %2172 = vsyncpa [#allocation4], 1 }
 0x248   :  { %2174 = vsyncpa [#allocation4 + $0x1], 1 }

</bundles_post_ra>
